<compile_context>
chip_gen: v7x
topology: tpu7x:2x2x1
jax: 0.10.0
libtpu: 0.0.40
codegen_flags: <defaults>
</compile_context>

<pallas_src>
import functools
import math

import jax
import jax.numpy as jnp
import numpy as np
from jax.experimental import pallas as pl
from jax.experimental.pallas import tpu as pltpu

EPS = float(jnp.finfo(jnp.float32).eps)   # torch.finfo(torch.float32).eps
MAG_CLAMP_MIN = 1e-7
_LANE = 128
_MAX_TILE_N = 1024                         # rows per tile (multiple of 8)
_TILE_BYTES_CAP = 2 * 1024 * 1024          # cap per bf16 frame tile


def _round_up(v, m):
    return ((v + m - 1) // m) * m


def _cdiv(a, b):
    return (a + b - 1) // b


# -----------------------------------------------------------------------------
# Pallas kernel: frames @ windowed-DFT -> clamped power / magnitude -> partials
# -----------------------------------------------------------------------------
def _stft_loss_kernel(xf_ref, yf_ref, dft_ref, acc_ref, *, tile_n, k_mag, packed):
    i = pl.program_id(1)                   # tile index within this core's slice

    @pl.when(i == 0)
    def _():
        acc_ref[...] = jnp.zeros_like(acc_ref)

    dft = dft_ref[...]                     # bf16, hann window folded in

    def clamped_power(frames):
        z = jnp.dot(frames, dft, preferred_element_type=jnp.float32)
        if packed:
            # cos in lanes [0,64), sin in lanes [64,128): single 128-lane matmul.
            # re^2 + im^2 duplicated across both 64-lane halves via an XLU roll
            # (direction irrelevant for shift == width/2).
            p = z * z
            p = p + pltpu.roll(p, shift=k_mag // 2, axis=1)
        else:
            re = z[:, :k_mag]              # 128-lane-aligned static slices
            im = z[:, k_mag:]
            p = re * re + im * im
        # Uniform clamp: padded rows / padded lanes have power exactly 0 ->
        # exactly 1e-7; corrected by a trace-time scalar bias in the wrapper.
        return jnp.maximum(p, jnp.float32(MAG_CLAMP_MIN))

    px = clamped_power(xf_ref[...])
    py = clamped_power(yf_ref[...])
    x_mag = jnp.sqrt(px)
    y_mag = jnp.sqrt(py)

    d = y_mag - x_mag
    # |log(EPS+y) - log(EPS+x)| == |log((EPS+y)/(EPS+x))| : one log + one divide
    # per bin; padded slots give exactly log(1) == 0.
    la = jnp.abs(jnp.log((EPS + y_mag) / (EPS + x_mag)))

    def rowgroup_sum(v):
        # (tile_n, k_mag) -> (8, k_mag): layout-preserving reshape, pure vreg adds.
        return jnp.sum(v.reshape(tile_n // 8, 8, k_mag), axis=0)

    acc_ref[0, 0] += rowgroup_sum(d * d)   # ||y - x||_F^2 partial
    acc_ref[0, 1] += rowgroup_sum(py)      # ||y||_F^2 partial (clamped power)
    acc_ref[0, 2] += rowgroup_sum(la)      # log-L1 partial


def _stft_partial_sums(xf, yf, dft_mat, *, tile_n, num_tiles, k_mag, packed):
    n_rows_pad, n_fft = xf.shape
    dft_w = dft_mat.shape[1]
    tiles_per_core = num_tiles // 2

    def frame_map(c, i):
        return (c * tiles_per_core + i, 0)

    kernel = functools.partial(
        _stft_loss_kernel, tile_n=tile_n, k_mag=k_mag, packed=packed)

    out = pl.pallas_call(
        kernel,
        out_shape=jax.ShapeDtypeStruct((2, 3, 8, k_mag), jnp.float32),
        grid=(2, tiles_per_core),
        in_specs=[
            pl.BlockSpec((tile_n, n_fft), frame_map),            # x frames (bf16)
            pl.BlockSpec((tile_n, n_fft), frame_map),            # y frames (bf16)
            pl.BlockSpec((n_fft, dft_w), lambda c, i: (0, 0)),   # windowed DFT (bf16)
        ],
        # Per-core resident VMEM accumulator block: init at i==0, += every tile,
        # written back when the core's slice ends.  No SMEM, no in-kernel XLU reduce.
        out_specs=pl.BlockSpec((1, 3, 8, k_mag), lambda c, i: (c, 0, 0, 0)),
        compiler_params=pltpu.CompilerParams(
            dimension_semantics=("parallel", "arbitrary"),
            vmem_limit_bytes=32 * 1024 * 1024,
        ),
    )(xf, yf, dft_mat)
    # Tiny final reduction (2*3*8*k_mag floats) done in plain JAX.
    return jnp.sum(out, axis=(0, 2, 3))                           # (3,)


# -----------------------------------------------------------------------------
# Glue (plain JAX / numpy): reflect pad, framing, windowed DFT matrix setup
# -----------------------------------------------------------------------------
def _window_and_basis(n_fft, win_length):
    """Window-folded cos/sin DFT bases: (n_fft, n_bins) each, float32 numpy."""
    n_bins = n_fft // 2 + 1
    n = np.arange(n_fft, dtype=np.float64)
    k = np.arange(n_bins, dtype=np.float64)
    ang = 2.0 * math.pi * np.outer(n, k) / n_fft

    # torch.hann_window default: periodic=True; torch.stft zero-pads to n_fft, centered.
    m = np.arange(win_length, dtype=np.float64)
    win = 0.5 - 0.5 * np.cos(2.0 * math.pi * m / win_length)
    wfull = np.zeros((n_fft,), dtype=np.float64)
    lpad = (n_fft - win_length) // 2
    wfull[lpad:lpad + win_length] = win

    cos_m = (wfull[:, None] * np.cos(ang)).astype(np.float32)
    sin_m = (wfull[:, None] * np.sin(ang)).astype(np.float32)
    return cos_m, sin_m


def _make_windowed_dft(n_fft, win_length, n_bins, k_mag, packed):
    """Packed: (n_fft, 128) with cos in [0,n_bins), sin in [64,64+n_bins).
    Unpacked: (n_fft, 2*k_mag) = [cos | sin], lane-padded with zeros."""
    cos_m, sin_m = _window_and_basis(n_fft, win_length)
    if packed:
        mat = np.zeros((n_fft, k_mag), dtype=np.float32)
        mat[:, :n_bins] = cos_m
        mat[:, k_mag // 2:k_mag // 2 + n_bins] = sin_m
    else:
        mat = np.zeros((n_fft, 2 * k_mag), dtype=np.float32)
        mat[:, :n_bins] = cos_m
        mat[:, k_mag:k_mag + n_bins] = sin_m
    return jnp.asarray(mat).astype(jnp.bfloat16)


def _frame_signal(sig, n_fft, hop):
    """sig: (BC, T) -> (BC * n_frames, n_fft), torch.stft center=True framing."""
    bc, t = sig.shape
    pad = n_fft // 2
    padded = jnp.pad(sig, ((0, 0), (pad, pad)), mode="reflect")       # (bc, t+n_fft)
    n_frames = 1 + t // hop
    if n_fft % hop == 0:
        # static strided slices + reshapes instead of an XLA gather
        r = n_fft // hop
        parts = [padded[:, j * hop:(j + n_frames) * hop].reshape(bc, n_frames, hop)
                 for j in range(r)]
        frames = jnp.concatenate(parts, axis=-1)                      # (bc, n_frames, n_fft)
    else:
        idx = jnp.arange(n_frames)[:, None] * hop + jnp.arange(n_fft)[None, :]
        frames = padded[:, idx]
    return frames.reshape(bc * n_frames, n_fft), n_frames


def mrstft_loss(x, y,
                n_ffts=(64, 128, 32),
                hop_lengths=(16, 32, 8),
                win_lengths=(48, 96, 24),
                factor_sc=0.1,
                factor_mag=0.1):
    """x, y: (B, C, T) float32. Returns shape-(1,) loss (matches torch module)."""
    B, C, T = x.shape
    # bf16 inputs: DEFAULT-precision f32 dots truncate to bf16 on the MXU anyway;
    # this halves framed-array DMA bytes.  All magnitude/log math stays f32.
    x2 = x.reshape(B * C, T).astype(jnp.bfloat16)
    y2 = y.reshape(B * C, T).astype(jnp.bfloat16)

    sc_total = jnp.zeros((), jnp.float32)
    mag_total = jnp.zeros((), jnp.float32)

    for n_fft, hop, win_len in zip(n_ffts, hop_lengths, win_lengths):
        xf, n_frames = _frame_signal(x2, n_fft, hop)
        yf, _ = _frame_signal(y2, n_fft, hop)

        n_rows = B * C * n_frames
        n_bins = n_fft // 2 + 1
        packed = n_bins <= _LANE // 2              # cos|sin share one 128-lane block
        k_mag = _LANE if packed else _round_up(n_bins, _LANE)
        dup = 2 if packed else 1                   # each valid bin counted `dup` times

        # Tile sizing: big tiles (fewer grid steps), even tile count for the
        # 2-way core split, byte cap so huge n_fft configs stay under scoped VMEM.
        max_rows = max(8, min(_MAX_TILE_N, (_TILE_BYTES_CAP // (2 * n_fft)) // 8 * 8))
        num_tiles = max(2, _cdiv(n_rows, max_rows))
        num_tiles += num_tiles % 2
        tile_n = _round_up(_cdiv(n_rows, num_tiles), 8)
        n_rows_pad = tile_n * num_tiles
        if n_rows_pad != n_rows:
            pad_rows = ((0, n_rows_pad - n_rows), (0, 0))
            xf = jnp.pad(xf, pad_rows)
            yf = jnp.pad(yf, pad_rows)

        dft_mat = _make_windowed_dft(n_fft, win_len, n_bins, k_mag, packed)

        sums = _stft_partial_sums(
            xf, yf, dft_mat,
            tile_n=tile_n, num_tiles=num_tiles, k_mag=k_mag, packed=packed)

        # Padded rows / lanes contribute exactly 0 to sums[0] and sums[2]
        # (x_mag == y_mag there) and exactly 1e-7 per slot to sums[1];
        # packed mode duplicates every valid bin across the two halves.
        bias_y = MAG_CLAMP_MIN * (n_rows_pad * k_mag - n_rows * n_bins * dup)
        sq_sum = sums[0] / dup
        y_sum = (sums[1] - bias_y) / dup
        log_sum = sums[2] / dup

        sc_total = sc_total + jnp.sqrt(sq_sum) / (jnp.sqrt(y_sum) + EPS)
        mag_total = mag_total + log_sum / (n_rows * n_bins)

    n_res = len(n_ffts)
    sc_total = sc_total / n_res
    mag_total = mag_total / n_res
    return (factor_sc * sc_total + factor_mag * mag_total).reshape(1)


# -----------------------------------------------------------------------------
# Pure-JAX f32 reference (HIGHEST matmul precision) for a sanity check
# -----------------------------------------------------------------------------
def _reference_loss(x, y, n_ffts, hop_lengths, win_lengths, factor_sc, factor_mag):
    B, C, T = x.shape
    x2 = x.reshape(B * C, T).astype(jnp.float32)
    y2 = y.reshape(B * C, T).astype(jnp.float32)
    sc_total = jnp.zeros((), jnp.float32)
    mag_total = jnp.zeros((), jnp.float32)
    for n_fft, hop, win_len in zip(n_ffts, hop_lengths, win_lengths):
        cos_m, sin_m = _window_and_basis(n_fft, win_len)
        cos_m = jnp.asarray(cos_m)
        sin_m = jnp.asarray(sin_m)
        xf, _ = _frame_signal(x2, n_fft, hop)
        yf, _ = _frame_signal(y2, n_fft, hop)

        def mag(f):
            re = jnp.dot(f, cos_m, precision=jax.lax.Precision.HIGHEST)
            im = jnp.dot(f, sin_m, precision=jax.lax.Precision.HIGHEST)
            return jnp.sqrt(jnp.maximum(re * re + im * im, MAG_CLAMP_MIN))

        xm, ym = mag(xf), mag(yf)
        sc_total = sc_total + jnp.linalg.norm(ym - xm) / (jnp.linalg.norm(ym) + EPS)
        mag_total = mag_total + jnp.mean(jnp.abs(jnp.log(EPS + ym) - jnp.log(EPS + xm)))
    n_res = len(n_ffts)
    return (factor_sc * (sc_total / n_res) + factor_mag * (mag_total / n_res)).reshape(1)


if __name__ == "__main__":
    key = jax.random.PRNGKey(0)
    kx, ky = jax.random.split(key)
    B, C, T = 2, 2, 256               # small shapes; _stft expects (B, C, T)
    x = jax.random.normal(kx, (B, C, T), dtype=jnp.float32)
    y = jax.random.normal(ky, (B, C, T), dtype=jnp.float32)

    loss = jax.jit(mrstft_loss)(x, y)
    jax.block_until_ready(loss)
    assert loss.shape == (1,) and bool(jnp.isfinite(loss).all())

    ref = _reference_loss(x, y, (64, 128, 32), (16, 32, 8), (48, 96, 24), 0.1, 0.1)
    rel = float(jnp.abs(loss - ref)[0] / jnp.maximum(jnp.abs(ref)[0], 1e-6))
    assert rel < 5e-2, f"relative error {rel} (kernel {float(loss[0])}, ref {float(ref[0])})"
    print("KERNEL_OK")
</pallas_src>

<mosaic_0001>
module attributes {stable_mosaic.version = 11 : i64} {
  func.func @_stft_loss_kernel(%arg0: i32, %arg1: i32, %arg2: memref<40x64xbf16, #tpu.memory_space<vmem>>, %arg3: memref<40x64xbf16, #tpu.memory_space<vmem>>, %arg4: memref<64x128xbf16, #tpu.memory_space<vmem>>, %arg5: memref<1x3x8x128xf32, #tpu.memory_space<vmem>>) attributes {dimension_semantics = [#tpu.dimension_semantics<parallel>, #tpu.dimension_semantics<arbitrary>], iteration_bounds = array<i64: 2, 1>, scalar_prefetch = 0 : i64, scratch_operands = 0 : i64, tpu.core_type = #tpu.core_type<tc>, window_params = [{transform_indices = @transform_0, window_bounds = array<i64: 40, 64>}, {transform_indices = @transform_1, window_bounds = array<i64: 40, 64>}, {pipeline_mode = #tpu.pipeline_mode<synchronous>, transform_indices = @transform_2, window_bounds = array<i64: 64, 128>}, {transform_indices = @transform_3, window_bounds = array<i64: 1, 3, 8, 128>}]} {
    %c0_i32 = arith.constant 0 : i32
    %0 = arith.cmpi eq, %arg1, %c0_i32 : i32
    %1 = arith.extui %0 : i1 to i32
    %c0_i32_0 = arith.constant 0 : i32
    %2 = arith.cmpi ne, %1, %c0_i32_0 : i32
    scf.if %2 {
      %cst_37 = arith.constant 0.000000e+00 : f32
      %53 = vector.broadcast %cst_37 : f32 to vector<1x3x8x128xf32>
      %c0_38 = arith.constant 0 : index
      %c0_39 = arith.constant 0 : index
      %c0_40 = arith.constant 0 : index
      %c0_41 = arith.constant 0 : index
      %54 = vector.load %arg5[%c0_38, %c0_39, %c0_40, %c0_41] : memref<1x3x8x128xf32, #tpu.memory_space<vmem>>, vector<1x3x8x128xf32>
      tpu.vector_store %arg5[%c0_38, %c0_39, %c0_40, %c0_41], %53 {strides = array<i32>} : memref<1x3x8x128xf32, #tpu.memory_space<vmem>>, vector<1x3x8x128xf32>,
    } else {
    }
    %c0 = arith.constant 0 : index
    %c0_1 = arith.constant 0 : index
    %3 = vector.load %arg4[%c0, %c0_1] : memref<64x128xbf16, #tpu.memory_space<vmem>>, vector<64x128xbf16>
    %c0_2 = arith.constant 0 : index
    %c0_3 = arith.constant 0 : index
    %4 = vector.load %arg2[%c0_2, %c0_3] : memref<40x64xbf16, #tpu.memory_space<vmem>>, vector<40x64xbf16>
    %cst = arith.constant dense<0.000000e+00> : vector<40x128xf32>
    %5 = tpu.matmul %4, %3, %cst {dimension_numbers = #tpu.dot_dimension_numbers<[1], [0], [0], [1], [0, 0, 1, 1], [], []>} : vector<40x64xbf16>, vector<64x128xbf16>, vector<40x128xf32> -> vector<40x128xf32>
    %6 = arith.mulf %5, %5 : vector<40x128xf32>
    %c64_i32 = arith.constant 64 : i32
    %7 = tpu.dynamic_rotate %6 by %c64_i32 dim 1 : vector<40x128xf32>, i32 -> vector<40x128xf32>
    %8 = arith.addf %6, %7 : vector<40x128xf32>
    %cst_4 = arith.constant 1.000000e-07 : f32
    %9 = vector.broadcast %cst_4 : f32 to vector<40x128xf32>
    %10 = arith.maximumf %8, %9 : vector<40x128xf32>
    %c0_5 = arith.constant 0 : index
    %c0_6 = arith.constant 0 : index
    %11 = vector.load %arg3[%c0_5, %c0_6] : memref<40x64xbf16, #tpu.memory_space<vmem>>, vector<40x64xbf16>
    %cst_7 = arith.constant dense<0.000000e+00> : vector<40x128xf32>
    %12 = tpu.matmul %11, %3, %cst_7 {dimension_numbers = #tpu.dot_dimension_numbers<[1], [0], [0], [1], [0, 0, 1, 1], [], []>} : vector<40x64xbf16>, vector<64x128xbf16>, vector<40x128xf32> -> vector<40x128xf32>
    %13 = arith.mulf %12, %12 : vector<40x128xf32>
    %c64_i32_8 = arith.constant 64 : i32
    %14 = tpu.dynamic_rotate %13 by %c64_i32_8 dim 1 : vector<40x128xf32>, i32 -> vector<40x128xf32>
    %15 = arith.addf %13, %14 : vector<40x128xf32>
    %cst_9 = arith.constant 1.000000e-07 : f32
    %16 = vector.broadcast %cst_9 : f32 to vector<40x128xf32>
    %17 = arith.maximumf %15, %16 : vector<40x128xf32>
    %18 = math.sqrt %10 : vector<40x128xf32>
    %19 = math.sqrt %17 : vector<40x128xf32>
    %20 = arith.subf %19, %18 : vector<40x128xf32>
    %cst_10 = arith.constant 1.1920929E-7 : f32
    %21 = vector.broadcast %cst_10 : f32 to vector<40x128xf32>
    %22 = arith.addf %21, %19 : vector<40x128xf32>
    %cst_11 = arith.constant 1.1920929E-7 : f32
    %23 = vector.broadcast %cst_11 : f32 to vector<40x128xf32>
    %24 = arith.addf %23, %18 : vector<40x128xf32>
    %25 = arith.divf %22, %24 : vector<40x128xf32>
    %26 = math.log %25 : vector<40x128xf32>
    %27 = math.absf %26 : vector<40x128xf32>
    %c0_12 = arith.constant 0 : index
    %c0_13 = arith.constant 0 : index
    %c0_14 = arith.constant 0 : index
    %c0_15 = arith.constant 0 : index
    %28 = vector.load %arg5[%c0_12, %c0_13, %c0_14, %c0_15] : memref<1x3x8x128xf32, #tpu.memory_space<vmem>>, vector<1x1x8x128xf32>
    %29 = vector.shape_cast %28 : vector<1x1x8x128xf32> to vector<8x128xf32>
    %30 = arith.mulf %20, %20 : vector<40x128xf32>
    %31 = vector.shape_cast %30 : vector<40x128xf32> to vector<5x8x128xf32>
    %cst_16 = arith.constant dense<0.000000e+00> : vector<8x128xf32>
    %32 = vector.multi_reduction <add>, %31, %cst_16 [0] : vector<5x8x128xf32> to vector<8x128xf32>
    %33 = arith.addf %29, %32 : vector<8x128xf32>
    %c0_17 = arith.constant 0 : index
    %c0_18 = arith.constant 0 : index
    %c0_19 = arith.constant 0 : index
    %c0_20 = arith.constant 0 : index
    %34 = vector.load %arg5[%c0_17, %c0_18, %c0_19, %c0_20] : memref<1x3x8x128xf32, #tpu.memory_space<vmem>>, vector<1x1x8x128xf32>
    %35 = vector.shape_cast %34 : vector<1x1x8x128xf32> to vector<8x128xf32>
    %36 = vector.shape_cast %33 : vector<8x128xf32> to vector<1x1x8x128xf32>
    tpu.vector_store %arg5[%c0_17, %c0_18, %c0_19, %c0_20], %36 {strides = array<i32>} : memref<1x3x8x128xf32, #tpu.memory_space<vmem>>, vector<1x1x8x128xf32>,
    %c0_21 = arith.constant 0 : index
    %c1 = arith.constant 1 : index
    %c0_22 = arith.constant 0 : index
    %c0_23 = arith.constant 0 : index
    %37 = vector.load %arg5[%c0_21, %c1, %c0_22, %c0_23] : memref<1x3x8x128xf32, #tpu.memory_space<vmem>>, vector<1x1x8x128xf32>
    %38 = vector.shape_cast %37 : vector<1x1x8x128xf32> to vector<8x128xf32>
    %39 = vector.shape_cast %17 : vector<40x128xf32> to vector<5x8x128xf32>
    %cst_24 = arith.constant dense<0.000000e+00> : vector<8x128xf32>
    %40 = vector.multi_reduction <add>, %39, %cst_24 [0] : vector<5x8x128xf32> to vector<8x128xf32>
    %41 = arith.addf %38, %40 : vector<8x128xf32>
    %c0_25 = arith.constant 0 : index
    %c1_26 = arith.constant 1 : index
    %c0_27 = arith.constant 0 : index
    %c0_28 = arith.constant 0 : index
    %42 = vector.load %arg5[%c0_25, %c1_26, %c0_27, %c0_28] : memref<1x3x8x128xf32, #tpu.memory_space<vmem>>, vector<1x1x8x128xf32>
    %43 = vector.shape_cast %42 : vector<1x1x8x128xf32> to vector<8x128xf32>
    %44 = vector.shape_cast %41 : vector<8x128xf32> to vector<1x1x8x128xf32>
    tpu.vector_store %arg5[%c0_25, %c1_26, %c0_27, %c0_28], %44 {strides = array<i32>} : memref<1x3x8x128xf32, #tpu.memory_space<vmem>>, vector<1x1x8x128xf32>,
    %c0_29 = arith.constant 0 : index
    %c2 = arith.constant 2 : index
    %c0_30 = arith.constant 0 : index
    %c0_31 = arith.constant 0 : index
    %45 = vector.load %arg5[%c0_29, %c2, %c0_30, %c0_31] : memref<1x3x8x128xf32, #tpu.memory_space<vmem>>, vector<1x1x8x128xf32>
    %46 = vector.shape_cast %45 : vector<1x1x8x128xf32> to vector<8x128xf32>
    %47 = vector.shape_cast %27 : vector<40x128xf32> to vector<5x8x128xf32>
    %cst_32 = arith.constant dense<0.000000e+00> : vector<8x128xf32>
    %48 = vector.multi_reduction <add>, %47, %cst_32 [0] : vector<5x8x128xf32> to vector<8x128xf32>
    %49 = arith.addf %46, %48 : vector<8x128xf32>
    %c0_33 = arith.constant 0 : index
    %c2_34 = arith.constant 2 : index
    %c0_35 = arith.constant 0 : index
    %c0_36 = arith.constant 0 : index
    %50 = vector.load %arg5[%c0_33, %c2_34, %c0_35, %c0_36] : memref<1x3x8x128xf32, #tpu.memory_space<vmem>>, vector<1x1x8x128xf32>
    %51 = vector.shape_cast %50 : vector<1x1x8x128xf32> to vector<8x128xf32>
    %52 = vector.shape_cast %49 : vector<8x128xf32> to vector<1x1x8x128xf32>
    tpu.vector_store %arg5[%c0_33, %c2_34, %c0_35, %c0_36], %52 {strides = array<i32>} : memref<1x3x8x128xf32, #tpu.memory_space<vmem>>, vector<1x1x8x128xf32>,
    return
  }
  func.func @transform_0(%arg0: i32, %arg1: i32) -> (i32, i32) {
    %c1_i32 = arith.constant 1 : i32
    %0 = arith.muli %arg0, %c1_i32 : i32
    %1 = arith.addi %0, %arg1 : i32
    %c0_i32 = arith.constant 0 : i32
    %c0_i32_0 = arith.constant 0 : i32
    return %1, %c0_i32 : i32, i32
  }
  func.func @transform_1(%arg0: i32, %arg1: i32) -> (i32, i32) {
    %c1_i32 = arith.constant 1 : i32
    %0 = arith.muli %arg0, %c1_i32 : i32
    %1 = arith.addi %0, %arg1 : i32
    %c0_i32 = arith.constant 0 : i32
    %c0_i32_0 = arith.constant 0 : i32
    return %1, %c0_i32 : i32, i32
  }
  func.func @transform_2(%arg0: i32, %arg1: i32) -> (i32, i32) {
    %c0_i32 = arith.constant 0 : i32
    %c0_i32_0 = arith.constant 0 : i32
    %c0_i32_1 = arith.constant 0 : i32
    return %c0_i32, %c0_i32_0 : i32, i32
  }
  func.func @transform_3(%arg0: i32, %arg1: i32) -> (i32, i32, i32, i32) {
    %c0_i32 = arith.constant 0 : i32
    %c0_i32_0 = arith.constant 0 : i32
    %c0_i32_1 = arith.constant 0 : i32
    %c0_i32_2 = arith.constant 0 : i32
    return %arg0, %c0_i32, %c0_i32_0, %c0_i32_1 : i32, i32, i32, i32
  }
}

module attributes {stable_mosaic.version = 11 : i64} {
  func.func @_stft_loss_kernel(%arg0: i32, %arg1: i32, %arg2: memref<24x128xbf16, #tpu.memory_space<vmem>>, %arg3: memref<24x128xbf16, #tpu.memory_space<vmem>>, %arg4: memref<128x256xbf16, #tpu.memory_space<vmem>>, %arg5: memref<1x3x8x128xf32, #tpu.memory_space<vmem>>) attributes {dimension_semantics = [#tpu.dimension_semantics<parallel>, #tpu.dimension_semantics<arbitrary>], iteration_bounds = array<i64: 2, 1>, scalar_prefetch = 0 : i64, scratch_operands = 0 : i64, tpu.core_type = #tpu.core_type<tc>, window_params = [{transform_indices = @transform_0, window_bounds = array<i64: 24, 128>}, {transform_indices = @transform_1, window_bounds = array<i64: 24, 128>}, {pipeline_mode = #tpu.pipeline_mode<synchronous>, transform_indices = @transform_2, window_bounds = array<i64: 128, 256>}, {transform_indices = @transform_3, window_bounds = array<i64: 1, 3, 8, 128>}]} {
    %c0_i32 = arith.constant 0 : i32
    %0 = arith.cmpi eq, %arg1, %c0_i32 : i32
    %1 = arith.extui %0 : i1 to i32
    %c0_i32_0 = arith.constant 0 : i32
    %2 = arith.cmpi ne, %1, %c0_i32_0 : i32
    scf.if %2 {
      %cst_36 = arith.constant 0.000000e+00 : f32
      %57 = vector.broadcast %cst_36 : f32 to vector<1x3x8x128xf32>
      %c0_37 = arith.constant 0 : index
      %c0_38 = arith.constant 0 : index
      %c0_39 = arith.constant 0 : index
      %c0_40 = arith.constant 0 : index
      %58 = vector.load %arg5[%c0_37, %c0_38, %c0_39, %c0_40] : memref<1x3x8x128xf32, #tpu.memory_space<vmem>>, vector<1x3x8x128xf32>
      tpu.vector_store %arg5[%c0_37, %c0_38, %c0_39, %c0_40], %57 {strides = array<i32>} : memref<1x3x8x128xf32, #tpu.memory_space<vmem>>, vector<1x3x8x128xf32>,
    } else {
    }
    %c0 = arith.constant 0 : index
    %c0_1 = arith.constant 0 : index
    %3 = vector.load %arg4[%c0, %c0_1] : memref<128x256xbf16, #tpu.memory_space<vmem>>, vector<128x256xbf16>
    %c0_2 = arith.constant 0 : index
    %c0_3 = arith.constant 0 : index
    %4 = vector.load %arg2[%c0_2, %c0_3] : memref<24x128xbf16, #tpu.memory_space<vmem>>, vector<24x128xbf16>
    %cst = arith.constant dense<0.000000e+00> : vector<24x256xf32>
    %5 = tpu.matmul %4, %3, %cst {dimension_numbers = #tpu.dot_dimension_numbers<[1], [0], [0], [1], [0, 0, 1, 1], [], []>} : vector<24x128xbf16>, vector<128x256xbf16>, vector<24x256xf32> -> vector<24x256xf32>
    %6 = vector.extract_strided_slice %5 {offsets = [0, 0], sizes = [24, 128], strides = [1, 1]} : vector<24x256xf32> to vector<24x128xf32>
    %7 = vector.extract_strided_slice %5 {offsets = [0, 128], sizes = [24, 128], strides = [1, 1]} : vector<24x256xf32> to vector<24x128xf32>
    %8 = arith.mulf %6, %6 : vector<24x128xf32>
    %9 = arith.mulf %7, %7 : vector<24x128xf32>
    %10 = arith.addf %8, %9 : vector<24x128xf32>
    %cst_4 = arith.constant 1.000000e-07 : f32
    %11 = vector.broadcast %cst_4 : f32 to vector<24x128xf32>
    %12 = arith.maximumf %10, %11 : vector<24x128xf32>
    %c0_5 = arith.constant 0 : index
    %c0_6 = arith.constant 0 : index
    %13 = vector.load %arg3[%c0_5, %c0_6] : memref<24x128xbf16, #tpu.memory_space<vmem>>, vector<24x128xbf16>
    %cst_7 = arith.constant dense<0.000000e+00> : vector<24x256xf32>
    %14 = tpu.matmul %13, %3, %cst_7 {dimension_numbers = #tpu.dot_dimension_numbers<[1], [0], [0], [1], [0, 0, 1, 1], [], []>} : vector<24x128xbf16>, vector<128x256xbf16>, vector<24x256xf32> -> vector<24x256xf32>
    %15 = vector.extract_strided_slice %14 {offsets = [0, 0], sizes = [24, 128], strides = [1, 1]} : vector<24x256xf32> to vector<24x128xf32>
    %16 = vector.extract_strided_slice %14 {offsets = [0, 128], sizes = [24, 128], strides = [1, 1]} : vector<24x256xf32> to vector<24x128xf32>
    %17 = arith.mulf %15, %15 : vector<24x128xf32>
    %18 = arith.mulf %16, %16 : vector<24x128xf32>
    %19 = arith.addf %17, %18 : vector<24x128xf32>
    %cst_8 = arith.constant 1.000000e-07 : f32
    %20 = vector.broadcast %cst_8 : f32 to vector<24x128xf32>
    %21 = arith.maximumf %19, %20 : vector<24x128xf32>
    %22 = math.sqrt %12 : vector<24x128xf32>
    %23 = math.sqrt %21 : vector<24x128xf32>
    %24 = arith.subf %23, %22 : vector<24x128xf32>
    %cst_9 = arith.constant 1.1920929E-7 : f32
    %25 = vector.broadcast %cst_9 : f32 to vector<24x128xf32>
    %26 = arith.addf %25, %23 : vector<24x128xf32>
    %cst_10 = arith.constant 1.1920929E-7 : f32
    %27 = vector.broadcast %cst_10 : f32 to vector<24x128xf32>
    %28 = arith.addf %27, %22 : vector<24x128xf32>
    %29 = arith.divf %26, %28 : vector<24x128xf32>
    %30 = math.log %29 : vector<24x128xf32>
    %31 = math.absf %30 : vector<24x128xf32>
    %c0_11 = arith.constant 0 : index
    %c0_12 = arith.constant 0 : index
    %c0_13 = arith.constant 0 : index
    %c0_14 = arith.constant 0 : index
    %32 = vector.load %arg5[%c0_11, %c0_12, %c0_13, %c0_14] : memref<1x3x8x128xf32, #tpu.memory_space<vmem>>, vector<1x1x8x128xf32>
    %33 = vector.shape_cast %32 : vector<1x1x8x128xf32> to vector<8x128xf32>
    %34 = arith.mulf %24, %24 : vector<24x128xf32>
    %35 = vector.shape_cast %34 : vector<24x128xf32> to vector<3x8x128xf32>
    %cst_15 = arith.constant dense<0.000000e+00> : vector<8x128xf32>
    %36 = vector.multi_reduction <add>, %35, %cst_15 [0] : vector<3x8x128xf32> to vector<8x128xf32>
    %37 = arith.addf %33, %36 : vector<8x128xf32>
    %c0_16 = arith.constant 0 : index
    %c0_17 = arith.constant 0 : index
    %c0_18 = arith.constant 0 : index
    %c0_19 = arith.constant 0 : index
    %38 = vector.load %arg5[%c0_16, %c0_17, %c0_18, %c0_19] : memref<1x3x8x128xf32, #tpu.memory_space<vmem>>, vector<1x1x8x128xf32>
    %39 = vector.shape_cast %38 : vector<1x1x8x128xf32> to vector<8x128xf32>
    %40 = vector.shape_cast %37 : vector<8x128xf32> to vector<1x1x8x128xf32>
    tpu.vector_store %arg5[%c0_16, %c0_17, %c0_18, %c0_19], %40 {strides = array<i32>} : memref<1x3x8x128xf32, #tpu.memory_space<vmem>>, vector<1x1x8x128xf32>,
    %c0_20 = arith.constant 0 : index
    %c1 = arith.constant 1 : index
    %c0_21 = arith.constant 0 : index
    %c0_22 = arith.constant 0 : index
    %41 = vector.load %arg5[%c0_20, %c1, %c0_21, %c0_22] : memref<1x3x8x128xf32, #tpu.memory_space<vmem>>, vector<1x1x8x128xf32>
    %42 = vector.shape_cast %41 : vector<1x1x8x128xf32> to vector<8x128xf32>
    %43 = vector.shape_cast %21 : vector<24x128xf32> to vector<3x8x128xf32>
    %cst_23 = arith.constant dense<0.000000e+00> : vector<8x128xf32>
    %44 = vector.multi_reduction <add>, %43, %cst_23 [0] : vector<3x8x128xf32> to vector<8x128xf32>
    %45 = arith.addf %42, %44 : vector<8x128xf32>
    %c0_24 = arith.constant 0 : index
    %c1_25 = arith.constant 1 : index
    %c0_26 = arith.constant 0 : index
    %c0_27 = arith.constant 0 : index
    %46 = vector.load %arg5[%c0_24, %c1_25, %c0_26, %c0_27] : memref<1x3x8x128xf32, #tpu.memory_space<vmem>>, vector<1x1x8x128xf32>
    %47 = vector.shape_cast %46 : vector<1x1x8x128xf32> to vector<8x128xf32>
    %48 = vector.shape_cast %45 : vector<8x128xf32> to vector<1x1x8x128xf32>
    tpu.vector_store %arg5[%c0_24, %c1_25, %c0_26, %c0_27], %48 {strides = array<i32>} : memref<1x3x8x128xf32, #tpu.memory_space<vmem>>, vector<1x1x8x128xf32>,
    %c0_28 = arith.constant 0 : index
    %c2 = arith.constant 2 : index
    %c0_29 = arith.constant 0 : index
    %c0_30 = arith.constant 0 : index
    %49 = vector.load %arg5[%c0_28, %c2, %c0_29, %c0_30] : memref<1x3x8x128xf32, #tpu.memory_space<vmem>>, vector<1x1x8x128xf32>
    %50 = vector.shape_cast %49 : vector<1x1x8x128xf32> to vector<8x128xf32>
    %51 = vector.shape_cast %31 : vector<24x128xf32> to vector<3x8x128xf32>
    %cst_31 = arith.constant dense<0.000000e+00> : vector<8x128xf32>
    %52 = vector.multi_reduction <add>, %51, %cst_31 [0] : vector<3x8x128xf32> to vector<8x128xf32>
    %53 = arith.addf %50, %52 : vector<8x128xf32>
    %c0_32 = arith.constant 0 : index
    %c2_33 = arith.constant 2 : index
    %c0_34 = arith.constant 0 : index
    %c0_35 = arith.constant 0 : index
    %54 = vector.load %arg5[%c0_32, %c2_33, %c0_34, %c0_35] : memref<1x3x8x128xf32, #tpu.memory_space<vmem>>, vector<1x1x8x128xf32>
    %55 = vector.shape_cast %54 : vector<1x1x8x128xf32> to vector<8x128xf32>
    %56 = vector.shape_cast %53 : vector<8x128xf32> to vector<1x1x8x128xf32>
    tpu.vector_store %arg5[%c0_32, %c2_33, %c0_34, %c0_35], %56 {strides = array<i32>} : memref<1x3x8x128xf32, #tpu.memory_space<vmem>>, vector<1x1x8x128xf32>,
    return
  }
  func.func @transform_0(%arg0: i32, %arg1: i32) -> (i32, i32) {
    %c1_i32 = arith.constant 1 : i32
    %0 = arith.muli %arg0, %c1_i32 : i32
    %1 = arith.addi %0, %arg1 : i32
    %c0_i32 = arith.constant 0 : i32
    %c0_i32_0 = arith.constant 0 : i32
    return %1, %c0_i32 : i32, i32
  }
  func.func @transform_1(%arg0: i32, %arg1: i32) -> (i32, i32) {
    %c1_i32 = arith.constant 1 : i32
    %0 = arith.muli %arg0, %c1_i32 : i32
    %1 = arith.addi %0, %arg1 : i32
    %c0_i32 = arith.constant 0 : i32
    %c0_i32_0 = arith.constant 0 : i32
    return %1, %c0_i32 : i32, i32
  }
  func.func @transform_2(%arg0: i32, %arg1: i32) -> (i32, i32) {
    %c0_i32 = arith.constant 0 : i32
    %c0_i32_0 = arith.constant 0 : i32
    %c0_i32_1 = arith.constant 0 : i32
    return %c0_i32, %c0_i32_0 : i32, i32
  }
  func.func @transform_3(%arg0: i32, %arg1: i32) -> (i32, i32, i32, i32) {
    %c0_i32 = arith.constant 0 : i32
    %c0_i32_0 = arith.constant 0 : i32
    %c0_i32_1 = arith.constant 0 : i32
    %c0_i32_2 = arith.constant 0 : i32
    return %arg0, %c0_i32, %c0_i32_0, %c0_i32_1 : i32, i32, i32, i32
  }
}

module attributes {stable_mosaic.version = 11 : i64} {
  func.func @_stft_loss_kernel(%arg0: i32, %arg1: i32, %arg2: memref<72x32xbf16, #tpu.memory_space<vmem>>, %arg3: memref<72x32xbf16, #tpu.memory_space<vmem>>, %arg4: memref<32x128xbf16, #tpu.memory_space<vmem>>, %arg5: memref<1x3x8x128xf32, #tpu.memory_space<vmem>>) attributes {dimension_semantics = [#tpu.dimension_semantics<parallel>, #tpu.dimension_semantics<arbitrary>], iteration_bounds = array<i64: 2, 1>, scalar_prefetch = 0 : i64, scratch_operands = 0 : i64, tpu.core_type = #tpu.core_type<tc>, window_params = [{transform_indices = @transform_0, window_bounds = array<i64: 72, 32>}, {transform_indices = @transform_1, window_bounds = array<i64: 72, 32>}, {pipeline_mode = #tpu.pipeline_mode<synchronous>, transform_indices = @transform_2, window_bounds = array<i64: 32, 128>}, {transform_indices = @transform_3, window_bounds = array<i64: 1, 3, 8, 128>}]} {
    %c0_i32 = arith.constant 0 : i32
    %0 = arith.cmpi eq, %arg1, %c0_i32 : i32
    %1 = arith.extui %0 : i1 to i32
    %c0_i32_0 = arith.constant 0 : i32
    %2 = arith.cmpi ne, %1, %c0_i32_0 : i32
    scf.if %2 {
      %cst_37 = arith.constant 0.000000e+00 : f32
      %53 = vector.broadcast %cst_37 : f32 to vector<1x3x8x128xf32>
      %c0_38 = arith.constant 0 : index
      %c0_39 = arith.constant 0 : index
      %c0_40 = arith.constant 0 : index
      %c0_41 = arith.constant 0 : index
      %54 = vector.load %arg5[%c0_38, %c0_39, %c0_40, %c0_41] : memref<1x3x8x128xf32, #tpu.memory_space<vmem>>, vector<1x3x8x128xf32>
      tpu.vector_store %arg5[%c0_38, %c0_39, %c0_40, %c0_41], %53 {strides = array<i32>} : memref<1x3x8x128xf32, #tpu.memory_space<vmem>>, vector<1x3x8x128xf32>,
    } else {
    }
    %c0 = arith.constant 0 : index
    %c0_1 = arith.constant 0 : index
    %3 = vector.load %arg4[%c0, %c0_1] : memref<32x128xbf16, #tpu.memory_space<vmem>>, vector<32x128xbf16>
    %c0_2 = arith.constant 0 : index
    %c0_3 = arith.constant 0 : index
    %4 = vector.load %arg2[%c0_2, %c0_3] : memref<72x32xbf16, #tpu.memory_space<vmem>>, vector<72x32xbf16>
    %cst = arith.constant dense<0.000000e+00> : vector<72x128xf32>
    %5 = tpu.matmul %4, %3, %cst {dimension_numbers = #tpu.dot_dimension_numbers<[1], [0], [0], [1], [0, 0, 1, 1], [], []>} : vector<72x32xbf16>, vector<32x128xbf16>, vector<72x128xf32> -> vector<72x128xf32>
    %6 = arith.mulf %5, %5 : vector<72x128xf32>
    %c64_i32 = arith.constant 64 : i32
    %7 = tpu.dynamic_rotate %6 by %c64_i32 dim 1 : vector<72x128xf32>, i32 -> vector<72x128xf32>
    %8 = arith.addf %6, %7 : vector<72x128xf32>
    %cst_4 = arith.constant 1.000000e-07 : f32
    %9 = vector.broadcast %cst_4 : f32 to vector<72x128xf32>
    %10 = arith.maximumf %8, %9 : vector<72x128xf32>
    %c0_5 = arith.constant 0 : index
    %c0_6 = arith.constant 0 : index
    %11 = vector.load %arg3[%c0_5, %c0_6] : memref<72x32xbf16, #tpu.memory_space<vmem>>, vector<72x32xbf16>
    %cst_7 = arith.constant dense<0.000000e+00> : vector<72x128xf32>
    %12 = tpu.matmul %11, %3, %cst_7 {dimension_numbers = #tpu.dot_dimension_numbers<[1], [0], [0], [1], [0, 0, 1, 1], [], []>} : vector<72x32xbf16>, vector<32x128xbf16>, vector<72x128xf32> -> vector<72x128xf32>
    %13 = arith.mulf %12, %12 : vector<72x128xf32>
    %c64_i32_8 = arith.constant 64 : i32
    %14 = tpu.dynamic_rotate %13 by %c64_i32_8 dim 1 : vector<72x128xf32>, i32 -> vector<72x128xf32>
    %15 = arith.addf %13, %14 : vector<72x128xf32>
    %cst_9 = arith.constant 1.000000e-07 : f32
    %16 = vector.broadcast %cst_9 : f32 to vector<72x128xf32>
    %17 = arith.maximumf %15, %16 : vector<72x128xf32>
    %18 = math.sqrt %10 : vector<72x128xf32>
    %19 = math.sqrt %17 : vector<72x128xf32>
    %20 = arith.subf %19, %18 : vector<72x128xf32>
    %cst_10 = arith.constant 1.1920929E-7 : f32
    %21 = vector.broadcast %cst_10 : f32 to vector<72x128xf32>
    %22 = arith.addf %21, %19 : vector<72x128xf32>
    %cst_11 = arith.constant 1.1920929E-7 : f32
    %23 = vector.broadcast %cst_11 : f32 to vector<72x128xf32>
    %24 = arith.addf %23, %18 : vector<72x128xf32>
    %25 = arith.divf %22, %24 : vector<72x128xf32>
    %26 = math.log %25 : vector<72x128xf32>
    %27 = math.absf %26 : vector<72x128xf32>
    %c0_12 = arith.constant 0 : index
    %c0_13 = arith.constant 0 : index
    %c0_14 = arith.constant 0 : index
    %c0_15 = arith.constant 0 : index
    %28 = vector.load %arg5[%c0_12, %c0_13, %c0_14, %c0_15] : memref<1x3x8x128xf32, #tpu.memory_space<vmem>>, vector<1x1x8x128xf32>
    %29 = vector.shape_cast %28 : vector<1x1x8x128xf32> to vector<8x128xf32>
    %30 = arith.mulf %20, %20 : vector<72x128xf32>
    %31 = vector.shape_cast %30 : vector<72x128xf32> to vector<9x8x128xf32>
    %cst_16 = arith.constant dense<0.000000e+00> : vector<8x128xf32>
    %32 = vector.multi_reduction <add>, %31, %cst_16 [0] : vector<9x8x128xf32> to vector<8x128xf32>
    %33 = arith.addf %29, %32 : vector<8x128xf32>
    %c0_17 = arith.constant 0 : index
    %c0_18 = arith.constant 0 : index
    %c0_19 = arith.constant 0 : index
    %c0_20 = arith.constant 0 : index
    %34 = vector.load %arg5[%c0_17, %c0_18, %c0_19, %c0_20] : memref<1x3x8x128xf32, #tpu.memory_space<vmem>>, vector<1x1x8x128xf32>
    %35 = vector.shape_cast %34 : vector<1x1x8x128xf32> to vector<8x128xf32>
    %36 = vector.shape_cast %33 : vector<8x128xf32> to vector<1x1x8x128xf32>
    tpu.vector_store %arg5[%c0_17, %c0_18, %c0_19, %c0_20], %36 {strides = array<i32>} : memref<1x3x8x128xf32, #tpu.memory_space<vmem>>, vector<1x1x8x128xf32>,
    %c0_21 = arith.constant 0 : index
    %c1 = arith.constant 1 : index
    %c0_22 = arith.constant 0 : index
    %c0_23 = arith.constant 0 : index
    %37 = vector.load %arg5[%c0_21, %c1, %c0_22, %c0_23] : memref<1x3x8x128xf32, #tpu.memory_space<vmem>>, vector<1x1x8x128xf32>
    %38 = vector.shape_cast %37 : vector<1x1x8x128xf32> to vector<8x128xf32>
    %39 = vector.shape_cast %17 : vector<72x128xf32> to vector<9x8x128xf32>
    %cst_24 = arith.constant dense<0.000000e+00> : vector<8x128xf32>
    %40 = vector.multi_reduction <add>, %39, %cst_24 [0] : vector<9x8x128xf32> to vector<8x128xf32>
    %41 = arith.addf %38, %40 : vector<8x128xf32>
    %c0_25 = arith.constant 0 : index
    %c1_26 = arith.constant 1 : index
    %c0_27 = arith.constant 0 : index
    %c0_28 = arith.constant 0 : index
    %42 = vector.load %arg5[%c0_25, %c1_26, %c0_27, %c0_28] : memref<1x3x8x128xf32, #tpu.memory_space<vmem>>, vector<1x1x8x128xf32>
    %43 = vector.shape_cast %42 : vector<1x1x8x128xf32> to vector<8x128xf32>
    %44 = vector.shape_cast %41 : vector<8x128xf32> to vector<1x1x8x128xf32>
    tpu.vector_store %arg5[%c0_25, %c1_26, %c0_27, %c0_28], %44 {strides = array<i32>} : memref<1x3x8x128xf32, #tpu.memory_space<vmem>>, vector<1x1x8x128xf32>,
    %c0_29 = arith.constant 0 : index
    %c2 = arith.constant 2 : index
    %c0_30 = arith.constant 0 : index
    %c0_31 = arith.constant 0 : index
    %45 = vector.load %arg5[%c0_29, %c2, %c0_30, %c0_31] : memref<1x3x8x128xf32, #tpu.memory_space<vmem>>, vector<1x1x8x128xf32>
    %46 = vector.shape_cast %45 : vector<1x1x8x128xf32> to vector<8x128xf32>
    %47 = vector.shape_cast %27 : vector<72x128xf32> to vector<9x8x128xf32>
    %cst_32 = arith.constant dense<0.000000e+00> : vector<8x128xf32>
    %48 = vector.multi_reduction <add>, %47, %cst_32 [0] : vector<9x8x128xf32> to vector<8x128xf32>
    %49 = arith.addf %46, %48 : vector<8x128xf32>
    %c0_33 = arith.constant 0 : index
    %c2_34 = arith.constant 2 : index
    %c0_35 = arith.constant 0 : index
    %c0_36 = arith.constant 0 : index
    %50 = vector.load %arg5[%c0_33, %c2_34, %c0_35, %c0_36] : memref<1x3x8x128xf32, #tpu.memory_space<vmem>>, vector<1x1x8x128xf32>
    %51 = vector.shape_cast %50 : vector<1x1x8x128xf32> to vector<8x128xf32>
    %52 = vector.shape_cast %49 : vector<8x128xf32> to vector<1x1x8x128xf32>
    tpu.vector_store %arg5[%c0_33, %c2_34, %c0_35, %c0_36], %52 {strides = array<i32>} : memref<1x3x8x128xf32, #tpu.memory_space<vmem>>, vector<1x1x8x128xf32>,
    return
  }
  func.func @transform_0(%arg0: i32, %arg1: i32) -> (i32, i32) {
    %c1_i32 = arith.constant 1 : i32
    %0 = arith.muli %arg0, %c1_i32 : i32
    %1 = arith.addi %0, %arg1 : i32
    %c0_i32 = arith.constant 0 : i32
    %c0_i32_0 = arith.constant 0 : i32
    return %1, %c0_i32 : i32, i32
  }
  func.func @transform_1(%arg0: i32, %arg1: i32) -> (i32, i32) {
    %c1_i32 = arith.constant 1 : i32
    %0 = arith.muli %arg0, %c1_i32 : i32
    %1 = arith.addi %0, %arg1 : i32
    %c0_i32 = arith.constant 0 : i32
    %c0_i32_0 = arith.constant 0 : i32
    return %1, %c0_i32 : i32, i32
  }
  func.func @transform_2(%arg0: i32, %arg1: i32) -> (i32, i32) {
    %c0_i32 = arith.constant 0 : i32
    %c0_i32_0 = arith.constant 0 : i32
    %c0_i32_1 = arith.constant 0 : i32
    return %c0_i32, %c0_i32_0 : i32, i32
  }
  func.func @transform_3(%arg0: i32, %arg1: i32) -> (i32, i32, i32, i32) {
    %c0_i32 = arith.constant 0 : i32
    %c0_i32_0 = arith.constant 0 : i32
    %c0_i32_1 = arith.constant 0 : i32
    %c0_i32_2 = arith.constant 0 : i32
    return %arg0, %c0_i32, %c0_i32_0, %c0_i32_1 : i32, i32, i32, i32
  }
}

</mosaic_0001>

<bundles_post_ra>
// kernel: mrstft_loss.3
= control target key start
LH: loop header
LB: loop body
LE: loop exit
PB: predicated region body
PF: predicated region fallthrough
CT: control target
= control target key end

     0   :  { %s900_s12 = smov 0   ;;  %s902_s13 = smov 0   ;;  %s1060_s0 = inlined_call_operand.vmem [shape: bf16[80,64], index: 0, kind: input, shape index: {}]   ;;  %s1061_s1 = inlined_call_operand.vmem [shape: bf16[80,64], index: 1, kind: input, shape index: {}]   ;;  %s1062_s2 = inlined_call_operand.vmem [shape: bf16[64,128], index: 2, kind: input, shape index: {}]   ;;  %s1063_s3 = inlined_call_operand.vmem [shape: f32[2,3,8,128], index: 3, kind: output, shape index: {}]  }
   0x1   :  { %s904_s14 = smov 0  }
   0x2 LB: > { %s25_s15 = sadd.s32 1, %s871_s13  ;;  %p695_p0 = scmp.ge.s32.totalorder %s875_s14, 1  ;;  %s875_s14 = sphi %s904_s14, %s13_s14   ;;  %s871_s13 = sphi %s902_s13, %s1065_s13   ;;  %s867_s12 = sphi %s900_s12, %s1064_s12  }
   0x3   : > { %p27_p1 = scmp.ge.s32.totalorder %s25_s15, 2  ;;  %p169_p2 = scmp.lt.s32.totalorder %s875_s14, 3 }
   0x5   : > { %s1067_s15 = smov (%p27_p1, %s25_s15), 0  ;;  %p170_p3 = pnand %p695_p0, %p169_p2 }
   0x6   : > { %v803_v0 = vld [vmem:[%s1062_s2] sm:$0xff] (!%p170_p3)   ;;  %v877_v1 = vmov (!%p170_p3), 0.0   ;;  %v804_v2 = vld [vmem:[%s1062_s2 + $0x8] sm:$0xff] (!%p170_p3)   ;;  %s201_s20 = smul.u32 (!%p170_p3), 5, %s867_s12  ;;  %vm878_vm0 = vmmov (!%p170_p3), 0   ;;  %v805_v3 = vld [vmem:[%s1062_s2 + $0x10] sm:$0xff] (!%p170_p3)  }
   0x7   : > { %173 = sbr.rel (%p170_p3) target bundleno = 422 (0x1a6), region = 32  ;;  %735 = vmatprep.subr.bf16.mxu0 (!%p170_p3), %v877_v1  ;;  %755 = vmatprep.subr.bf16.mxu1 (!%p170_p3), %v877_v1  ;;  %v806_v4 = vld [vmem:[%s1062_s2 + $0x18] sm:$0xff] (!%p170_p3)   ;;  %vm279_vm1 = vcmask (!%p170_p3), 523264   ;;  %s879_s5 = smov (!%p170_p3), 64  }
   0x8   : > { %736 = vmatpush3.bf16.msra.mxu0 (!%p170_p3), %v803_v0  ;;  %756 = vmatpush3.bf16.msra.mxu1 (!%p170_p3), %v803_v0  ;;  %p202_p4 = scmp.lt.s32.totalorder (!%p170_p3), %s201_s20, 9  ;;  %p216_p5 = scmp.lt.s32.totalorder (!%p170_p3), %s867_s12, 1 }
   0x9   : > { %737 = vmatprep.subr.bf16.mxu0 (!%p170_p3), %v877_v1  ;;  %757 = vmatprep.subr.bf16.mxu1 (!%p170_p3), %v877_v1 }
   0xa   : > { %743 = vmatprep.mubr.msk.bf16.mxu0 (!%p170_p3), %vm878_vm0, %v877_v1  ;;  %763 = vmatprep.mubr.msk.bf16.mxu1 (!%p170_p3), %vm878_vm0, %v877_v1 }
   0xc   : > { %738 = vmatpush3.bf16.msra.mxu0 (!%p170_p3), %v804_v2  ;;  %758 = vmatpush3.bf16.msra.mxu1 (!%p170_p3), %v804_v2 }
   0xd   : > { %739 = vmatprep.subr.bf16.mxu0 (!%p170_p3), %v877_v1  ;;  %759 = vmatprep.subr.bf16.mxu1 (!%p170_p3), %v877_v1 }
   0xe   : > { %s1069_s20 = smov (!%p202_p4, %s201_s20), 9  ;;  %s1071_s12 = smov (!%p216_p5, %s867_s12), 1 }
   0xf   : > { %s696_s23 = sshll.u32 %s1069_s20, 2  ;;  %s775_s6 = smul.u32 24, %s1071_s12 }
  0x10   : > { %s205_s26 = scalar_lea.vmem %s1060_s0, %s696_s23  ;;  %740 = vmatpush3.bf16.msra.mxu0 %v805_v3  ;;  %760 = vmatpush3.bf16.msra.mxu1 %v805_v3  ;;  %s213_s4 = scalar_lea.vmem %s1061_s1, %s696_s23 }
  0x11   : > { %741 = vmatprep.subr.bf16.mxu0 %v877_v1  ;;  %761 = vmatprep.subr.bf16.mxu1 %v877_v1  ;;  %v807_v5 = vld [vmem:[%s205_s26] sm:$0xff]   ;;  %v808_v7 = vld [vmem:[%s205_s26 + $0x8] sm:$0xff]   ;;  %v810_v9 = vld [vmem:[%s205_s26 + $0x10] ss:$0 sps:$4 sm:$0xff]   ;;  %s1016_s9 = scalar_lea.vmem %s1063_s3, %s775_s6 }
  0x12   : > { %v809_v6 = vld [vmem:[%s213_s4] sm:$0xff]   ;;  %v811_v8 = vld [vmem:[%s213_s4 + $0x8] sm:$0xff]   ;;  %v812_v10 = vld [vmem:[%s213_s4 + $0x10] ss:$0 sps:$4 sm:$0xff]  }
  0x14   : > { %742 = vmatpush3.bf16.msra.mxu0 %v806_v4  ;;  %762 = vmatpush3.bf16.msra.mxu1 %v806_v4 }
  0x17   : > { %744 = vmatmul.mubr.msk.bf16.vlgmr.msra.gmra.mrb[0].mxu0 %vm279_vm1, %v807_v5  ;;  %764 = vmatmul.mubr.msk.bf16.vlgmr.msra.gmra.mrb[0].mxu1 %vm279_vm1, %v809_v6 }
  0x18   : > { %747 = vmatprep.mubr.msk.bf16.mxu0 %vm878_vm0, %v877_v1  ;;  %767 = vmatprep.mubr.msk.bf16.mxu1 %vm878_vm0, %v877_v1 }
  0x1f   : > { %748 = vmatmul.mubr.msk.bf16.gmra.mrb[4].mxu0 %vm279_vm1, %v808_v7  ;;  %768 = vmatmul.mubr.msk.bf16.gmra.mrb[4].mxu1 %vm279_vm1, %v811_v8 }
  0x20   : > { %751 = vmatprep.mubr.msk.bf16.mxu0 %vm878_vm0, %v877_v1  ;;  %771 = vmatprep.mubr.msk.bf16.mxu1 %vm878_vm0, %v877_v1 }
  0x27   : > { %752 = vmatmul.mubr.msk.bf16.gmra.mrb[8].mxu0 %vm279_vm1, %v810_v9  ;;  %772 = vmatmul.mubr.msk.bf16.gmra.mrb[8].mxu1 %vm279_vm1, %v812_v10 }
  0xea   : > { %v323_v11 = vpop.f32.mrb[0].mxu0  ;;  %v431_v12 = vpop.f32.mrb[0].mxu1 }
  0xeb   : > { %v345_v13 = vmul.f32 %v323_v11, %v323_v11  ;;  %v745_v14 = vpop.f32.mrb[1].mxu0  ;;  %v765_v15 = vpop.f32.mrb[1].mxu1  ;;  %v453_v33 = vmul.f32 %v431_v12, %v431_v12 }
  0xec   : > { %v326_v16 = vpop.f32.mrb[2].mxu0  ;;  %v434_v17 = vpop.f32.mrb[2].mxu1 }
  0xed   : > { %350 = vrot.lane.b32.xlu0 %v345_v13, %s879_s5  ;;  %v746_v18 = vpop.f32.mrb[3].mxu0  ;;  %v766_v19 = vpop.f32.mrb[3].mxu1  ;;  %v346_v20 = vmul.f32 %v326_v16, %v326_v16  ;;  %v454_v42 = vmul.f32 %v434_v17, %v434_v17 }
  0xf1   : > { %352 = vrot.lane.b32.xlu0 %v346_v20, %s879_s5 }
  0xf2   : > { %v331_v21 = vpop.f32.mrb[4].mxu0  ;;  %v439_v22 = vpop.f32.mrb[4].mxu1 }
  0xf3   : > { %v347_v23 = vmul.f32 %v331_v21, %v331_v21  ;;  %v749_v24 = vpop.f32.mrb[5].mxu0  ;;  %v769_v25 = vpop.f32.mrb[5].mxu1  ;;  %v455_v39 = vmul.f32 %v439_v22, %v439_v22 }
  0xf4   : > { %v334_v26 = vpop.f32.mrb[6].mxu0  ;;  %v442_v27 = vpop.f32.mrb[6].mxu1 }
  0xf5   : > { %354 = vrot.lane.b32.xlu1 %v347_v23, %s879_s5  ;;  %v750_v28 = vpop.f32.mrb[7].mxu0  ;;  %v770_v29 = vpop.f32.mrb[7].mxu1  ;;  %v348_v30 = vmul.f32 %v334_v26, %v334_v26  ;;  %v456_v44 = vmul.f32 %v442_v27, %v442_v27 }
  0xf9   : > { %356 = vrot.lane.b32.xlu1 %v348_v30, %s879_s5 }
  0xfa   : > { %v339_v31 = vpop.f32.mrb[8].mxu0  ;;  %v447_v32 = vpop.f32.mrb[8].mxu1 }
  0xfb   : > { %v349_v34 = vmul.f32 %v339_v31, %v339_v31  ;;  %v753_v35 = vpop.f32.mrb[9].mxu0  ;;  %v773_v36 = vpop.f32.mrb[9].mxu1  ;;  %v457_v43 = vmul.f32 %v447_v32, %v447_v32 }
  0xfc   : > { %v342_v37 = vpop.f32.mrb[10].mxu0  ;;  %v450_v38 = vpop.f32.mrb[10].mxu1 }
  0xfd   : > { %458 = vrot.lane.b32.xlu1 %v453_v33, %s879_s5  ;;  %358 = vrot.lane.b32.xlu0 %v349_v34, %s879_s5  ;;  %v754_v40 = vpop.f32.mrb[11].mxu0  ;;  %v774_v41 = vpop.f32.mrb[11].mxu1 }
 0x101   : > { %462 = vrot.lane.b32.xlu1 %v455_v39, %s879_s5  ;;  %460 = vrot.lane.b32.xlu0 %v454_v42, %s879_s5 }
 0x105   : > { %466 = vrot.lane.b32.xlu1 %v457_v43, %s879_s5  ;;  %464 = vrot.lane.b32.xlu0 %v456_v44, %s879_s5 }
 0x15f   : > { %v351_v45 = vpop.permute.xlu0 %350 }
 0x160   : > { %v360_v46 = vadd.f32 %v351_v45, %v345_v13 }
 0x162   : > { %v365_v47 = vmax.f32 %v360_v46, 1e-07 }
 0x163   : > { %v353_v48 = vpop.permute.xlu0 %352 }
 0x164   : > { %813 = vrsqrt.f32 %v365_v47  ;;  %v361_v49 = vadd.f32 %v353_v48, %v346_v20  ;;  %vm480_vm2 = vcmp.eq.f32.partialorder %v365_v47, inf  ;;  %v483_v0 = vand.u32 2147483648, %v365_v47 }
 0x165   : > { %vm482_vm3 = vcmp.eq.f32.partialorder %v365_v47, 0.0 }
 0x166   : > { %v366_v50 = vmax.f32 %v361_v49, 1e-07 }
 0x167   : > { %v355_v51 = vpop.permute.xlu1 %354 }
 0x168   : > { %v362_v52 = vadd.f32 %v355_v51, %v347_v23  ;;  %815 = vrsqrt.f32 %v366_v50  ;;  %vm487_vm4 = vcmp.eq.f32.partialorder %v366_v50, inf  ;;  %v490_v11 = vand.u32 2147483648, %v366_v50 }
 0x169   : > { %vm489_vm7 = vcmp.eq.f32.partialorder %v366_v50, 0.0 }
 0x16a   : > { %v367_v53 = vmax.f32 %v362_v52, 1e-07 }
 0x16b   : > { %v357_v54 = vpop.permute.xlu1 %356 }
 0x16c   : > { %817 = vrsqrt.f32 %v367_v53  ;;  %v363_v55 = vadd.f32 %v357_v54, %v348_v30  ;;  %vm494_vm5 = vcmp.eq.f32.partialorder %v367_v53, inf  ;;  %vm496_vm6 = vcmp.eq.f32.partialorder %v367_v53, 0.0 }
 0x16d   : > { %v497_v17 = vand.u32 2147483648, %v367_v53 }
 0x16e   : > { %v814_v56 = vpop.eup %813  ;;  %v368_v58 = vmax.f32 %v363_v55, 1e-07 }
 0x16f   : > { %v479_v57 = vmul.f32 %v814_v56, %v365_v47  ;;  %v459_v59 = vpop.permute.xlu1 %458  ;;  %v359_v60 = vpop.permute.xlu0 %358 }
 0x170   : > { %v468_v61 = vadd.f32 %v459_v59, %v453_v33  ;;  %v364_v62 = vadd.f32 %v359_v60, %v349_v34  ;;  %819 = vrsqrt.f32 %v368_v58  ;;  %vm501_vm8 = vcmp.eq.f32.partialorder %v368_v58, inf }
 0x171   : > { %v481_v63 = vsel %vm480_vm2, %v365_v47, %v479_v57  ;;  %v504_v28 = vand.u32 2147483648, %v368_v58  ;;  %vm503_vm9 = vcmp.eq.f32.partialorder %v368_v58, 0.0 }
 0x172   : > { %v955_v1 = vmax.f32 %v468_v61, 1e-07  ;;  %v957_v2 = vmax.f32 %v364_v62, 1e-07  ;;  %v816_v3 = vpop.eup %815  ;;  %v959_v4 = vsel %vm482_vm3, %v483_v0, %v481_v63 }
 0x173   : > { %v463_v5 = vpop.permute.xlu1 %462  ;;  %v461_v6 = vpop.permute.xlu0 %460  ;;  %v486_v7 = vmul.f32 %v816_v3, %v366_v50  ;;  %v558_v9 = vadd.f32 1.1920929e-07, %v959_v4 }
 0x174   : > { %821 = vrsqrt.f32 %v955_v1  ;;  %v470_v10 = vadd.f32 %v463_v5, %v455_v39  ;;  %v469_v13 = vadd.f32 %v461_v6, %v454_v42  ;;  %vm515_vm10 = vcmp.eq.f32.partialorder %v955_v1, inf }
 0x175   : > { %823 = vrsqrt.f32 %v957_v2  ;;  %v488_v16 = vsel %vm487_vm4, %v366_v50, %v486_v7  ;;  %vm517_vm11 = vcmp.eq.f32.partialorder %v955_v1, 0.0  ;;  %v518_v38 = vand.u32 2147483648, %v955_v1 }
 0x176   : > { %v818_v8 = vpop.eup %817  ;;  %v964_v18 = vmax.f32 %v470_v10, 1e-07  ;;  %v966_v20 = vmax.f32 %v469_v13, 1e-07  ;;  %825 = vrcp.f32 %v558_v9  ;;  %v971_v25 = vsel %vm489_vm7, %v490_v11, %v488_v16 }
 0x177   : > { %v493_v12 = vmul.f32 %v818_v8, %v367_v53  ;;  %v467_v14 = vpop.permute.xlu1 %466  ;;  %v465_v15 = vpop.permute.xlu0 %464  ;;  %v559_v33 = vadd.f32 1.1920929e-07, %v971_v25  ;;  %vm508_vm12 = vcmp.eq.f32.partialorder %v957_v2, inf  ;;  %vm510_vm13 = vcmp.eq.f32.partialorder %v957_v2, 0.0 }
 0x178   : > { %v472_v21 = vadd.f32 %v467_v14, %v457_v43  ;;  %v471_v22 = vadd.f32 %v465_v15, %v456_v44  ;;  %827 = vrsqrt.f32 %v964_v18  ;;  %v602_v29 = vadd.f32 %v966_v20, %v955_v1 }
 0x179   : > { %v495_v19 = vsel %vm494_vm5, %v367_v53, %v493_v12  ;;  %829 = vrsqrt.f32 %v966_v20  ;;  %v511_v44 = vand.u32 2147483648, %v957_v2  ;;  %vm529_vm14 = vcmp.eq.f32.partialorder %v964_v18, inf }
 0x17a   : > { %v968_v23 = vsel %vm496_vm6, %v497_v17, %v495_v19  ;;  %v820_v24 = vpop.eup %819  ;;  %v978_v30 = vmax.f32 %v472_v21, 1e-07  ;;  %v980_v31 = vmax.f32 %v471_v22, 1e-07  ;;  %v603_v39 = vadd.f32 %v602_v29, %v964_v18 }
 0x17b   : > { %v560_v26 = vadd.f32 1.1920929e-07, %v968_v23  ;;  %v500_v27 = vmul.f32 %v820_v24, %v368_v58  ;;  %vm531_vm15 = vcmp.eq.f32.partialorder %v964_v18, 0.0  ;;  %v532_v55 = vand.u32 2147483648, %v964_v18 }
 0x17c   : > { %v604_v47 = vadd.f32 %v603_v39, %v980_v31  ;;  %vm522_vm0 = vcmp.eq.f32.partialorder %v966_v20, inf  ;;  %vm524_vm1 = vcmp.eq.f32.partialorder %v966_v20, 0.0  ;;  %vm543_vm2 = vcmp.eq.f32.partialorder %v978_v30, inf }
 0x17d   : > { %831 = vrcp.f32 %v560_v26  ;;  %v502_v34 = vsel %vm501_vm8, %v368_v58, %v500_v27  ;;  %v525_v58 = vand.u32 2147483648, %v966_v20  ;;  %vm545_vm3 = vcmp.eq.f32.partialorder %v978_v30, 0.0 }
 0x17e   : > { %v822_v32 = vpop.eup %821  ;;  %v988_v35 = vsel %vm503_vm9, %v504_v28, %v502_v34  ;;  %833 = vrsqrt.f32 %v978_v30  ;;  %v605_v52 = vadd.f32 %v604_v47, %v978_v30  ;;  %vm536_vm4 = vcmp.eq.f32.partialorder %v980_v31, inf }
 0x17f   : > { %v514_v36 = vmul.f32 %v822_v32, %v955_v1  ;;  %v824_v37 = vpop.eup %823  ;;  %v561_v40 = vadd.f32 1.1920929e-07, %v988_v35  ;;  %835 = vrsqrt.f32 %v980_v31  ;;  %v539_v13 = vand.u32 2147483648, %v980_v31 }
 0x180   : > { %v507_v42 = vmul.f32 %v824_v37, %v957_v2  ;;  %837 = vrcp.f32 %v559_v33  ;;  %v826_v48 = vpop.eup %825  ;;  %716 = vst [vmem:[%s1016_s9 + $0x8] sm:$0xff] %v605_v52  ;;  %vm538_vm5 = vcmp.eq.f32.partialorder %v980_v31, 0.0 }
 0x181   : > { %v516_v41 = vsel %vm515_vm10, %v955_v1, %v514_v36  ;;  %839 = vrcp.f32 %v561_v40  ;;  %v546_v1 = vand.u32 2147483648, %v978_v30 }
 0x182   : > { %v519_v43 = vsel %vm517_vm11, %v518_v38, %v516_v41  ;;  %v509_v46 = vsel %vm508_vm12, %v957_v2, %v507_v42  ;;  %v828_v50 = vpop.eup %827 }
 0x183   : > { %v553_v45 = vadd.f32 1.1920929e-07, %v519_v43  ;;  %v512_v49 = vsel %vm510_vm13, %v511_v44, %v509_v46  ;;  %v830_v53 = vpop.eup %829  ;;  %v528_v54 = vmul.f32 %v828_v50, %v964_v18  ;;  %v548_v62 = vsub.f32 %v519_v43, %v959_v4 }
 0x184   : > { %v562_v51 = vadd.f32 1.1920929e-07, %v512_v49  ;;  %v521_v57 = vmul.f32 %v830_v53, %v966_v20 }
 0x185   : > { %v564_v56 = vmul.f32 %v826_v48, %v553_v45  ;;  %v530_v60 = vsel %vm529_vm14, %v964_v18, %v528_v54  ;;  %v589_v14 = vmul.f32 %v548_v62, %v548_v62 }
 0x186   : > { %841 = vrcp.f32 %v562_v51  ;;  %v533_v63 = vsel %vm531_vm15, %v532_v55, %v530_v60  ;;  %v523_v0 = vsel %vm522_vm0, %v966_v20, %v521_v57 }
 0x187   : > { %v832_v59 = vpop.eup %831  ;;  %v555_v2 = vadd.f32 1.1920929e-07, %v533_v63  ;;  %v526_v3 = vsel %vm524_vm1, %v525_v58, %v523_v0  ;;  %843 = vlog2.f32 %v564_v56  ;;  %v550_v4 = vsub.f32 %v533_v63, %v968_v23 }
 0x188   : > { %v834_v61 = vpop.eup %833  ;;  %v549_v7 = vsub.f32 %v526_v3, %v971_v25  ;;  %v554_v8 = vadd.f32 1.1920929e-07, %v526_v3 }
 0x189   : > { %v542_v5 = vmul.f32 %v834_v61, %v978_v30  ;;  %v836_v6 = vpop.eup %835  ;;  %v568_v10 = vmul.f32 %v832_v59, %v555_v2  ;;  %v591_v20 = vmul.f32 %v550_v4, %v550_v4 }
 0x18a   : > { %v838_v9 = vpop.eup %837  ;;  %v535_v12 = vmul.f32 %v836_v6, %v980_v31  ;;  %v590_v16 = vmul.f32 %v549_v7, %v549_v7 }
 0x18b   : > { %v544_v11 = vsel %vm543_vm2, %v978_v30, %v542_v5  ;;  %v566_v15 = vmul.f32 %v838_v9, %v554_v8  ;;  %845 = vlog2.f32 %v568_v10  ;;  %v840_v19 = vpop.eup %839 }
 0x18c   : > { %v547_v17 = vsel %vm545_vm3, %v546_v1, %v544_v11  ;;  %v537_v18 = vsel %vm536_vm4, %v980_v31, %v535_v12  ;;  %v594_v21 = vadd.f32 %v590_v16, %v589_v14 }
 0x18d   : > { %847 = vlog2.f32 %v566_v15  ;;  %v540_v22 = vsel %vm538_vm5, %v539_v13, %v537_v18  ;;  %v552_v23 = vsub.f32 %v547_v17, %v512_v49  ;;  %v557_v26 = vadd.f32 1.1920929e-07, %v547_v17 }
 0x18e   : > { %v551_v24 = vsub.f32 %v540_v22, %v988_v35  ;;  %v556_v25 = vadd.f32 1.1920929e-07, %v540_v22  ;;  %v595_v27 = vadd.f32 %v594_v21, %v591_v20 }
 0x18f   : > { %v593_v33 = vmul.f32 %v552_v23, %v552_v23 }
 0x190   : > { %v842_v28 = vpop.eup %841  ;;  %v570_v29 = vmul.f32 %v840_v19, %v556_v25  ;;  %v592_v30 = vmul.f32 %v551_v24, %v551_v24 }
 0x191   : > { %v572_v32 = vmul.f32 %v842_v28, %v557_v26  ;;  %v844_v31 = vpop.eup %843 }
 0x192   : > { %849 = vlog2.f32 %v570_v29  ;;  %v596_v34 = vadd.f32 %v595_v27, %v592_v30  ;;  %v574_v38 = vmul.f32 0.6931472, %v844_v31 }
 0x193   : > { %851 = vlog2.f32 %v572_v32 }
 0x194   : > { %v597_v36 = vadd.f32 %v596_v34, %v593_v33  ;;  %v583_v41 = vand.u32 2147483647, %v574_v38 }
 0x195   : > { %v846_v37 = vpop.eup %845 }
 0x196   : > { %v578_v40 = vmul.f32 0.6931472, %v846_v37  ;;  %599 = vst [vmem:[%s1016_s9] sm:$0xff] %v597_v36 }
 0x197   : > { %v848_v39 = vpop.eup %847 }
 0x198   : > { %v576_v35 = vmul.f32 0.6931472, %v848_v39  ;;  %v585_v44 = vand.u32 2147483647, %v578_v40 }
 0x19a   : > { %v584_v42 = vand.u32 2147483647, %v576_v35 }
 0x19c   : > { %v850_v43 = vpop.eup %849  ;;  %v610_v45 = vadd.f32 %v584_v42, %v583_v41 }
 0x19d   : > { %v852_v46 = vpop.eup %851  ;;  %v580_v47 = vmul.f32 0.6931472, %v850_v43 }
 0x19e   : > { %v582_v48 = vmul.f32 0.6931472, %v852_v46  ;;  %v611_v49 = vadd.f32 %v610_v45, %v585_v44 }
 0x19f   : > { %v586_v50 = vand.u32 2147483647, %v580_v47 }
 0x1a0   : > { %v587_v51 = vand.u32 2147483647, %v582_v48 }
 0x1a1   : > { %v612_v52 = vadd.f32 %v611_v49, %v586_v50 }
 0x1a3   : > { %v613_v53 = vadd.f32 %v612_v52, %v587_v51 }
 0x1a5   : > { %718 = vst [vmem:[%s1016_s9 + $0x10] sm:$0xff] %v613_v53 }
 0x1a6 PF: > { %s13_s14 = sadd.s32 1, %s875_s14   ;;  %s1064_s12 = smov %s871_s13 }
 0x1a7   : > { %p10_p6 = scmp.ge.s32.totalorder %s13_s14, 4   ;;  %s1065_s13 = smov %s1067_s15 }
 0x1a9   :  { %12 = sbr.rel (!%p10_p6) target bundleno = 2 (0x2), region = 71 }

// kernel: mrstft_loss.5
= control target key start
LH: loop header
LB: loop body
LE: loop exit
PB: predicated region body
PF: predicated region fallthrough
CT: control target
= control target key end

     0   :  { %s1148_s12 = smov 0   ;;  %s1150_s13 = smov 0   ;;  %s1519_s0 = inlined_call_operand.vmem [shape: bf16[144,32], index: 0, kind: input, shape index: {}]   ;;  %s1520_s1 = inlined_call_operand.vmem [shape: bf16[144,32], index: 1, kind: input, shape index: {}]   ;;  %s1521_s2 = inlined_call_operand.vmem [shape: bf16[32,128], index: 2, kind: input, shape index: {}]   ;;  %s1522_s3 = inlined_call_operand.vmem [shape: f32[2,3,8,128], index: 3, kind: output, shape index: {}]  }
   0x1   :  { %s1152_s14 = smov 0  }
   0x2 LB: > { %s25_s15 = sadd.s32 1, %s1119_s13  ;;  %p895_p0 = scmp.ge.s32.totalorder %s1123_s14, 1  ;;  %s1123_s14 = sphi %s1152_s14, %s13_s14   ;;  %s1119_s13 = sphi %s1150_s13, %s1524_s13   ;;  %s1115_s12 = sphi %s1148_s12, %s1523_s12  }
   0x3   : > { %p27_p1 = scmp.ge.s32.totalorder %s25_s15, 2  ;;  %p169_p2 = scmp.lt.s32.totalorder %s1123_s14, 3 }
   0x5   : > { %s1526_s15 = smov (%p27_p1, %s25_s15), 0  ;;  %p170_p3 = pnand %p895_p0, %p169_p2 }
   0x6   : > { %v1017_v0 = vld [vmem:[%s1521_s2] sm:$0xff] (!%p170_p3)   ;;  %v1125_v1 = vmov (!%p170_p3), 0.0   ;;  %v1018_v2 = vld [vmem:[%s1521_s2 + $0x8] sm:$0xff] (!%p170_p3)   ;;  %s201_s20 = smul.u32 (!%p170_p3), 9, %s1115_s12  ;;  %vm1126_vm0 = vmmov (!%p170_p3), 0   ;;  %vm277_vm1 = vcmask (!%p170_p3), 261120  }
   0x7   : > { %173 = sbr.rel (%p170_p3) target bundleno = 443 (0x1bb), region = 32  ;;  %941 = vmatprep.subr.bf16.mxu0 (!%p170_p3), %v1125_v1  ;;  %965 = vmatprep.subr.bf16.mxu1 (!%p170_p3), %v1125_v1  ;;  %s1127_s28 = smov (!%p170_p3), 64  }
   0x8   : > { %942 = vmatpush3.bf16.msra.mxu0 (!%p170_p3), %v1017_v0  ;;  %966 = vmatpush3.bf16.msra.mxu1 (!%p170_p3), %v1017_v0  ;;  %p202_p4 = scmp.lt.s32.totalorder (!%p170_p3), %s201_s20, 17  ;;  %p216_p5 = scmp.lt.s32.totalorder (!%p170_p3), %s1115_s12, 1 }
   0x9   : > { %943 = vmatprep.subr.bf16.mxu0 (!%p170_p3), %v1125_v1  ;;  %967 = vmatprep.subr.bf16.mxu1 (!%p170_p3), %v1125_v1 }
   0xa   : > { %945 = vmatprep.mubr.msk.bf16.mxu0 (!%p170_p3), %vm1126_vm0, %v1125_v1  ;;  %969 = vmatprep.mubr.msk.bf16.mxu1 (!%p170_p3), %vm1126_vm0, %v1125_v1 }
   0xc   : > { %944 = vmatpush3.bf16.msra.mxu0 (!%p170_p3), %v1018_v2  ;;  %968 = vmatpush3.bf16.msra.mxu1 (!%p170_p3), %v1018_v2 }
   0xe   : > { %s1528_s20 = smov (!%p202_p4, %s201_s20), 17  ;;  %s1530_s12 = smov (!%p216_p5, %s1115_s12), 1 }
   0xf   : > { %s896_s21 = sshll.u32 %s1528_s20, 2  ;;  %s989_s29 = smul.u32 24, %s1530_s12 }
  0x10   : > { %s205_s24 = scalar_lea.vmem %s1519_s0, %s896_s21  ;;  %s213_s27 = scalar_lea.vmem %s1520_s1, %s896_s21 }
  0x11   : > { %v1019_v3 = vld [vmem:[%s205_s24] sm:$0xff]   ;;  %v1021_v5 = vld [vmem:[%s205_s24 + $0x8] sm:$0xff]   ;;  %v1022_v7 = vld [vmem:[%s205_s24 + $0x10] sm:$0xff]   ;;  %s1497_s5 = scalar_lea.vmem %s1522_s3, %s989_s29 }
  0x12   : > { %v1020_v4 = vld [vmem:[%s213_s27] sm:$0xff]   ;;  %946 = vmatmul.mubr.msk.bf16.vlgmr.msra.gmra.mrb[0].mxu0 %vm277_vm1, %v1019_v3  ;;  %v1023_v6 = vld [vmem:[%s213_s27 + $0x8] sm:$0xff]   ;;  %v1025_v8 = vld [vmem:[%s213_s27 + $0x10] sm:$0xff]  }
  0x13   : > { %970 = vmatmul.mubr.msk.bf16.vlgmr.msra.gmra.mrb[0].mxu1 %vm277_vm1, %v1020_v4  ;;  %949 = vmatprep.mubr.msk.bf16.mxu0 %vm1126_vm0, %v1125_v1  ;;  %v1024_v9 = vld [vmem:[%s205_s24 + $0x18] sm:$0xff]   ;;  %v1026_v11 = vld [vmem:[%s205_s24 + $0x20] ss:$0 sps:$4 sm:$0xff]  }
  0x14   : > { %973 = vmatprep.mubr.msk.bf16.mxu1 %vm1126_vm0, %v1125_v1  ;;  %v1027_v10 = vld [vmem:[%s213_s27 + $0x18] sm:$0xff]   ;;  %v1028_v12 = vld [vmem:[%s213_s27 + $0x20] ss:$0 sps:$4 sm:$0xff]  }
  0x1a   : > { %950 = vmatmul.mubr.msk.bf16.gmra.mrb[4].mxu0 %vm277_vm1, %v1021_v5 }
  0x1b   : > { %953 = vmatprep.mubr.msk.bf16.mxu0 %vm1126_vm0, %v1125_v1  ;;  %974 = vmatmul.mubr.msk.bf16.gmra.mrb[4].mxu1 %vm277_vm1, %v1023_v6 }
  0x1c   : > { %977 = vmatprep.mubr.msk.bf16.mxu1 %vm1126_vm0, %v1125_v1 }
  0x22   : > { %954 = vmatmul.mubr.msk.bf16.gmra.mrb[8].mxu0 %vm277_vm1, %v1022_v7 }
  0x23   : > { %957 = vmatprep.mubr.msk.bf16.mxu0 %vm1126_vm0, %v1125_v1  ;;  %978 = vmatmul.mubr.msk.bf16.gmra.mrb[8].mxu1 %vm277_vm1, %v1025_v8 }
  0x24   : > { %981 = vmatprep.mubr.msk.bf16.mxu1 %vm1126_vm0, %v1125_v1 }
  0x2a   : > { %958 = vmatmul.mubr.msk.bf16.gmra.mrb[12].mxu0 %vm277_vm1, %v1024_v9 }
  0x2b   : > { %961 = vmatprep.mubr.msk.bf16.mxu0 %vm1126_vm0, %v1125_v1  ;;  %982 = vmatmul.mubr.msk.bf16.gmra.mrb[12].mxu1 %vm277_vm1, %v1027_v10 }
  0x2c   : > { %985 = vmatprep.mubr.msk.bf16.mxu1 %vm1126_vm0, %v1125_v1 }
  0x32   : > { %962 = vmatmul.mubr.msk.bf16.gmra.mrb[16].mxu0 %vm277_vm1, %v1026_v11 }
  0x33   : > { %986 = vmatmul.mubr.msk.bf16.gmra.mrb[16].mxu1 %vm277_vm1, %v1028_v12 }
  0xe5   : > { %v327_v13 = vpop.f32.mrb[0].mxu0 }
  0xe6   : > { %v1201_v14 = vmul.f32 %v327_v13, %v327_v13  ;;  %v491_v15 = vpop.f32.mrb[0].mxu1  ;;  %v947_v16 = vpop.f32.mrb[1].mxu0 }
  0xe7   : > { %v1203_v17 = vmul.f32 %v491_v15, %v491_v15  ;;  %v330_v18 = vpop.f32.mrb[2].mxu0  ;;  %v971_v19 = vpop.f32.mrb[1].mxu1 }
  0xe8   : > { %374 = vrot.lane.b32.xlu0 %v1201_v14, %s1127_s28  ;;  %v948_v20 = vpop.f32.mrb[3].mxu0  ;;  %v494_v21 = vpop.f32.mrb[2].mxu1  ;;  %v1209_v23 = vmul.f32 %v330_v18, %v330_v18 }
  0xe9   : > { %538 = vrot.lane.b32.xlu1 %v1203_v17, %s1127_s28  ;;  %v972_v22 = vpop.f32.mrb[3].mxu1  ;;  %v1213_v24 = vmul.f32 %v494_v21, %v494_v21 }
  0xec   : > { %376 = vrot.lane.b32.xlu0 %v1209_v23, %s1127_s28 }
  0xed   : > { %v335_v25 = vpop.f32.mrb[4].mxu0 }
  0xee   : > { %v1215_v26 = vmul.f32 %v335_v25, %v335_v25  ;;  %v951_v27 = vpop.f32.mrb[5].mxu0  ;;  %v499_v28 = vpop.f32.mrb[4].mxu1 }
  0xef   : > { %v338_v29 = vpop.f32.mrb[6].mxu0  ;;  %v975_v30 = vpop.f32.mrb[5].mxu1  ;;  %v1239_v55 = vmul.f32 %v499_v28, %v499_v28 }
  0xf0   : > { %540 = vrot.lane.b32.xlu0 %v1213_v24, %s1127_s28  ;;  %378 = vrot.lane.b32.xlu1 %v1215_v26, %s1127_s28  ;;  %v952_v31 = vpop.f32.mrb[7].mxu0  ;;  %v502_v32 = vpop.f32.mrb[6].mxu1  ;;  %v1221_v34 = vmul.f32 %v338_v29, %v338_v29 }
  0xf1   : > { %v976_v33 = vpop.f32.mrb[7].mxu1  ;;  %v1245_v57 = vmul.f32 %v502_v32, %v502_v32 }
  0xf4   : > { %380 = vrot.lane.b32.xlu1 %v1221_v34, %s1127_s28 }
  0xf5   : > { %v343_v35 = vpop.f32.mrb[8].mxu0 }
  0xf6   : > { %v1225_v36 = vmul.f32 %v343_v35, %v343_v35  ;;  %v955_v37 = vpop.f32.mrb[9].mxu0  ;;  %v507_v38 = vpop.f32.mrb[8].mxu1 }
  0xf7   : > { %v346_v39 = vpop.f32.mrb[10].mxu0  ;;  %v979_v40 = vpop.f32.mrb[9].mxu1  ;;  %v1253_v2 = vmul.f32 %v507_v38, %v507_v38 }
  0xf8   : > { %v1227_v41 = vmul.f32 %v346_v39, %v346_v39  ;;  %382 = vrot.lane.b32.xlu0 %v1225_v36, %s1127_s28  ;;  %v956_v42 = vpop.f32.mrb[11].mxu0  ;;  %v510_v43 = vpop.f32.mrb[10].mxu1 }
  0xf9   : > { %v980_v44 = vpop.f32.mrb[11].mxu1  ;;  %v1255_v3 = vmul.f32 %v510_v43, %v510_v43 }
  0xfa   : > { %384 = vrot.lane.b32.xlu1 %v1227_v41, %s1127_s28 }
  0xfd   : > { %v351_v45 = vpop.f32.mrb[12].mxu0 }
  0xfe   : > { %v1233_v46 = vmul.f32 %v351_v45, %v351_v45  ;;  %v959_v47 = vpop.f32.mrb[13].mxu0  ;;  %v515_v48 = vpop.f32.mrb[12].mxu1 }
  0xff   : > { %v354_v49 = vpop.f32.mrb[14].mxu0  ;;  %v983_v50 = vpop.f32.mrb[13].mxu1  ;;  %v1261_v4 = vmul.f32 %v515_v48, %v515_v48 }
 0x100   : > { %v1235_v51 = vmul.f32 %v354_v49, %v354_v49  ;;  %386 = vrot.lane.b32.xlu0 %v1233_v46, %s1127_s28  ;;  %v960_v52 = vpop.f32.mrb[15].mxu0  ;;  %v518_v53 = vpop.f32.mrb[14].mxu1 }
 0x101   : > { %v984_v54 = vpop.f32.mrb[15].mxu1  ;;  %v1263_v5 = vmul.f32 %v518_v53, %v518_v53 }
 0x102   : > { %388 = vrot.lane.b32.xlu1 %v1235_v51, %s1127_s28 }
 0x104   : > { %542 = vrot.lane.b32.xlu0 %v1239_v55, %s1127_s28 }
 0x105   : > { %v359_v56 = vpop.f32.mrb[16].mxu0 }
 0x106   : > { %v1247_v58 = vmul.f32 %v359_v56, %v359_v56  ;;  %v963_v59 = vpop.f32.mrb[17].mxu0  ;;  %v523_v60 = vpop.f32.mrb[16].mxu1 }
 0x107   : > { %v362_v61 = vpop.f32.mrb[18].mxu0  ;;  %v987_v62 = vpop.f32.mrb[17].mxu1  ;;  %v1265_v6 = vmul.f32 %v523_v60, %v523_v60 }
 0x108   : > { %544 = vrot.lane.b32.xlu0 %v1245_v57, %s1127_s28  ;;  %390 = vrot.lane.b32.xlu1 %v1247_v58, %s1127_s28  ;;  %v964_v63 = vpop.f32.mrb[19].mxu0  ;;  %v526_v0 = vpop.f32.mrb[18].mxu1 }
 0x109   : > { %v988_v1 = vpop.f32.mrb[19].mxu1 }
 0x10c   : > { %548 = vrot.lane.b32.xlu0 %v1255_v3, %s1127_s28  ;;  %546 = vrot.lane.b32.xlu1 %v1253_v2, %s1127_s28 }
 0x110   : > { %552 = vrot.lane.b32.xlu0 %v1263_v5, %s1127_s28  ;;  %550 = vrot.lane.b32.xlu1 %v1261_v4, %s1127_s28 }
 0x114   : > { %554 = vrot.lane.b32.xlu1 %v1265_v6, %s1127_s28 }
 0x15a   : > { %v375_v7 = vpop.permute.xlu0 %374 }
 0x15b   : > { %v539_v8 = vpop.permute.xlu1 %538  ;;  %v392_v9 = vadd.f32 %v375_v7, %v1201_v14 }
 0x15c   : > { %v556_v10 = vadd.f32 %v539_v8, %v1203_v17 }
 0x15d   : > { %v401_v11 = vmax.f32 %v392_v9, 1e-07 }
 0x15e   : > { %v1275_v12 = vmax.f32 %v556_v10, 1e-07  ;;  %v377_v13 = vpop.permute.xlu0 %376 }
 0x15f   : > { %1029 = vrsqrt.f32 %v401_v11  ;;  %v393_v15 = vadd.f32 %v377_v13, %v1209_v23  ;;  %vm576_vm2 = vcmp.eq.f32.partialorder %v401_v11, inf  ;;  %v579_v30 = vand.u32 2147483648, %v401_v11 }
 0x160   : > { %1031 = vrsqrt.f32 %v1275_v12  ;;  %vm578_vm3 = vcmp.eq.f32.partialorder %v401_v11, 0.0  ;;  %vm639_vm4 = vcmp.eq.f32.partialorder %v1275_v12, inf  ;;  %v642_v40 = vand.u32 2147483648, %v1275_v12 }
 0x161   : > { %v402_v19 = vmax.f32 %v393_v15, 1e-07  ;;  %vm641_vm6 = vcmp.eq.f32.partialorder %v1275_v12, 0.0 }
 0x162   : > { %v541_v16 = vpop.permute.xlu0 %540  ;;  %v379_v18 = vpop.permute.xlu1 %378 }
 0x163   : > { %v557_v20 = vadd.f32 %v541_v16, %v1213_v24  ;;  %v394_v21 = vadd.f32 %v379_v18, %v1215_v26  ;;  %1033 = vrsqrt.f32 %v402_v19  ;;  %vm583_vm5 = vcmp.eq.f32.partialorder %v402_v19, inf }
 0x164   : > { %v586_v42 = vand.u32 2147483648, %v402_v19  ;;  %vm585_vm7 = vcmp.eq.f32.partialorder %v402_v19, 0.0 }
 0x165   : > { %v1281_v14 = vmax.f32 %v557_v20, 1e-07  ;;  %v403_v17 = vmax.f32 %v394_v21, 1e-07 }
 0x166   : > { %v381_v22 = vpop.permute.xlu1 %380 }
 0x167   : > { %v395_v25 = vadd.f32 %v381_v22, %v1221_v34  ;;  %1035 = vrsqrt.f32 %v1281_v14  ;;  %vm646_vm8 = vcmp.eq.f32.partialorder %v1281_v14, inf  ;;  %v649_v53 = vand.u32 2147483648, %v1281_v14 }
 0x168   : > { %1037 = vrsqrt.f32 %v403_v17  ;;  %vm590_vm9 = vcmp.eq.f32.partialorder %v403_v17, inf  ;;  %v593_v60 = vand.u32 2147483648, %v403_v17  ;;  %vm648_vm10 = vcmp.eq.f32.partialorder %v1281_v14, 0.0 }
 0x169   : > { %v1030_v27 = vpop.eup %1029  ;;  %v1285_v28 = vmax.f32 %v395_v25, 1e-07  ;;  %vm592_vm11 = vcmp.eq.f32.partialorder %v403_v17, 0.0 }
 0x16a   : > { %v575_v23 = vmul.f32 %v1030_v27, %v401_v11  ;;  %v383_v29 = vpop.permute.xlu0 %382  ;;  %v1032_v26 = vpop.eup %1031 }
 0x16b   : > { %v396_v24 = vadd.f32 %v383_v29, %v1225_v36  ;;  %1039 = vrsqrt.f32 %v1285_v28  ;;  %v638_v39 = vmul.f32 %v1032_v26, %v1275_v12  ;;  %vm597_vm12 = vcmp.eq.f32.partialorder %v1285_v28, inf }
 0x16c   : > { %v577_v31 = vsel %vm576_vm2, %v401_v11, %v575_v23  ;;  %v385_v32 = vpop.permute.xlu1 %384  ;;  %vm599_vm13 = vcmp.eq.f32.partialorder %v1285_v28, 0.0  ;;  %v600_v18 = vand.u32 2147483648, %v1285_v28  ;;  %v794_v26 = vadd.f32 %v1281_v14, %v1275_v12 }
 0x16d   : > { %v580_v33 = vsel %vm578_vm3, %v579_v30, %v577_v31  ;;  %v1289_v34 = vmax.f32 %v396_v24, 1e-07  ;;  %v397_v37 = vadd.f32 %v385_v32, %v1227_v41  ;;  %v1034_v38 = vpop.eup %1033  ;;  %v640_v48 = vsel %vm639_vm4, %v1275_v12, %v638_v39 }
 0x16e   : > { %v718_v35 = vadd.f32 1.1920929e-07, %v580_v33  ;;  %v582_v36 = vmul.f32 %v1034_v38, %v402_v19  ;;  %v643_v0 = vsel %vm641_vm6, %v642_v40, %v640_v48 }
 0x16f   : > { %1041 = vrsqrt.f32 %v1289_v34  ;;  %v1296_v43 = vmax.f32 %v397_v37, 1e-07  ;;  %v709_v13 = vadd.f32 1.1920929e-07, %v643_v0  ;;  %v700_v15 = vsub.f32 %v643_v0, %v580_v33 }
 0x170   : > { %1043 = vrcp.f32 %v718_v35  ;;  %v584_v45 = vsel %vm583_vm5, %v402_v19, %v582_v36  ;;  %vm604_vm14 = vcmp.eq.f32.partialorder %v1289_v34, inf  ;;  %v607_v23 = vand.u32 2147483648, %v1289_v34 }
 0x171   : > { %v1036_v44 = vpop.eup %1035  ;;  %v587_v49 = vsel %vm585_vm7, %v586_v42, %v584_v45  ;;  %1045 = vrsqrt.f32 %v1296_v43  ;;  %vm606_vm15 = vcmp.eq.f32.partialorder %v1289_v34, 0.0  ;;  %vm611_vm0 = vcmp.eq.f32.partialorder %v1296_v43, inf }
 0x172   : > { %v387_v41 = vpop.permute.xlu0 %386  ;;  %v1038_v47 = vpop.eup %1037  ;;  %v645_v50 = vmul.f32 %v1036_v44, %v1281_v14  ;;  %v719_v52 = vadd.f32 1.1920929e-07, %v587_v49  ;;  %vm613_vm1 = vcmp.eq.f32.partialorder %v1296_v43, 0.0  ;;  %v614_v44 = vand.u32 2147483648, %v1296_v43 }
 0x173   : > { %v589_v54 = vmul.f32 %v1038_v47, %v403_v17  ;;  %v398_v61 = vadd.f32 %v387_v41, %v1233_v46 }
 0x174   : > { %v389_v56 = vpop.permute.xlu1 %388  ;;  %v647_v59 = vsel %vm646_vm8, %v1281_v14, %v645_v50  ;;  %1047 = vrcp.f32 %v719_v52  ;;  %v773_v14 = vmul.f32 %v700_v15, %v700_v15 }
 0x175   : > { %v399_v62 = vadd.f32 %v389_v56, %v1235_v51  ;;  %v1040_v63 = vpop.eup %1039  ;;  %v591_v1 = vsel %vm590_vm9, %v403_v17, %v589_v54  ;;  %v650_v8 = vsel %vm648_vm10, %v649_v53, %v647_v59  ;;  %v1315_v46 = vmax.f32 %v398_v61, 1e-07 }
 0x176   : > { %v543_v7 = vpop.permute.xlu0 %542  ;;  %v1310_v9 = vsel %vm592_vm11, %v593_v60, %v591_v1  ;;  %v596_v10 = vmul.f32 %v1040_v63, %v1285_v28  ;;  %v701_v20 = vsub.f32 %v650_v8, %v587_v49 }
 0x177   : > { %v1317_v51 = vmax.f32 %v399_v62, 1e-07  ;;  %v720_v21 = vadd.f32 1.1920929e-07, %v1310_v9  ;;  %1049 = vrsqrt.f32 %v1315_v46  ;;  %v558_v29 = vadd.f32 %v543_v7, %v1239_v55 }
 0x178   : > { %v598_v16 = vsel %vm597_vm12, %v1285_v28, %v596_v10  ;;  %v774_v32 = vmul.f32 %v701_v20, %v701_v20  ;;  %vm618_vm2 = vcmp.eq.f32.partialorder %v1315_v46, inf  ;;  %vm620_vm3 = vcmp.eq.f32.partialorder %v1315_v46, 0.0 }
 0x179   : > { %v1042_v11 = vpop.eup %1041  ;;  %v1324_v27 = vsel %vm599_vm13, %v600_v18, %v598_v16  ;;  %1051 = vrsqrt.f32 %v1317_v51  ;;  %v1339_v38 = vmax.f32 %v558_v29, 1e-07  ;;  %vm625_vm4 = vcmp.eq.f32.partialorder %v1317_v51, inf }
 0x17a   : > { %v1044_v19 = vpop.eup %1043  ;;  %v603_v17 = vmul.f32 %v1042_v11, %v1289_v34  ;;  %v545_v22 = vpop.permute.xlu0 %544  ;;  %1053 = vrcp.f32 %v720_v21  ;;  %v721_v33 = vadd.f32 1.1920929e-07, %v1324_v27  ;;  %v1350_v41 = vadd.f32 %v774_v32, %v773_v14 }
 0x17b   : > { %v391_v25 = vpop.permute.xlu1 %390  ;;  %v728_v30 = vmul.f32 %v1044_v19, %v709_v13  ;;  %v1046_v24 = vpop.eup %1045  ;;  %vm627_vm5 = vcmp.eq.f32.partialorder %v1317_v51, 0.0  ;;  %v628_v60 = vand.u32 2147483648, %v1317_v51  ;;  %vm653_vm6 = vcmp.eq.f32.partialorder %v1339_v38, inf }
 0x17c   : > { %v605_v28 = vsel %vm604_vm14, %v1289_v34, %v603_v17  ;;  %v610_v55 = vmul.f32 %v1046_v24, %v1296_v43  ;;  %v559_v34 = vadd.f32 %v545_v22, %v1245_v57  ;;  %v400_v39 = vadd.f32 %v391_v25, %v1247_v58 }
 0x17d   : > { %v1334_v31 = vsel %vm606_vm15, %v607_v23, %v605_v28  ;;  %1055 = vlog2.f32 %v728_v30  ;;  %v710_v57 = vadd.f32 1.1920929e-07, %v650_v8  ;;  %vm655_vm7 = vcmp.eq.f32.partialorder %v1339_v38, 0.0 }
 0x17e   : > { %v549_v35 = vpop.permute.xlu0 %548  ;;  %v722_v36 = vadd.f32 1.1920929e-07, %v1334_v31  ;;  %v612_v40 = vsel %vm611_vm0, %v1296_v43, %v610_v55  ;;  %v1048_v42 = vpop.eup %1047  ;;  %1057 = vrsqrt.f32 %v1339_v38  ;;  %v1357_v47 = vmax.f32 %v400_v39, 1e-07 }
 0x17f   : > { %v547_v37 = vpop.permute.xlu1 %546  ;;  %v561_v12 = vadd.f32 %v549_v35, %v1255_v3  ;;  %1059 = vrcp.f32 %v721_v33  ;;  %v1353_v58 = vsel %vm613_vm1, %v614_v44, %v612_v40  ;;  %v1355_v3 = vmax.f32 %v559_v34, 1e-07 }
 0x180   : > { %v560_v45 = vadd.f32 %v547_v37, %v1253_v2  ;;  %v730_v49 = vmul.f32 %v1048_v42, %v710_v57  ;;  %1061 = vrcp.f32 %v722_v36  ;;  %v621_v2 = vand.u32 2147483648, %v1315_v46 }
 0x181   : > { %v1359_v48 = vmax.f32 %v561_v12, 1e-07  ;;  %v1050_v43 = vpop.eup %1049  ;;  %1063 = vrsqrt.f32 %v1355_v3  ;;  %v723_v56 = vadd.f32 1.1920929e-07, %v1353_v58  ;;  %v656_v8 = vand.u32 2147483648, %v1339_v38 }
 0x182   : > { %v1366_v50 = vmax.f32 %v560_v45, 1e-07  ;;  %v553_v52 = vpop.permute.xlu0 %552  ;;  %v617_v59 = vmul.f32 %v1050_v43, %v1315_v46  ;;  %1065 = vrsqrt.f32 %v1357_v47  ;;  %v795_v10 = vadd.f32 %v794_v26, %v1339_v38 }
 0x183   : > { %v551_v53 = vpop.permute.xlu1 %550  ;;  %v1052_v54 = vpop.eup %1051  ;;  %1067 = vrsqrt.f32 %v1359_v48  ;;  %v563_v0 = vadd.f32 %v553_v52, %v1263_v5  ;;  %vm660_vm8 = vcmp.eq.f32.partialorder %v1355_v3, inf  ;;  %vm662_vm9 = vcmp.eq.f32.partialorder %v1355_v3, 0.0 }
 0x184   : > { %v624_v61 = vmul.f32 %v1052_v54, %v1317_v51  ;;  %v1054_v62 = vpop.eup %1053  ;;  %1069 = vlog2.f32 %v730_v49  ;;  %v619_v63 = vsel %vm618_vm2, %v1315_v46, %v617_v59  ;;  %v562_v1 = vadd.f32 %v551_v53, %v1261_v4 }
 0x185   : > { %1071 = vrsqrt.f32 %v1366_v50  ;;  %v1391_v13 = vsel %vm620_vm3, %v621_v2, %v619_v63  ;;  %v663_v15 = vand.u32 2147483648, %v1355_v3  ;;  %v796_v16 = vadd.f32 %v795_v10, %v1355_v3 }
 0x186   : > { %v626_v7 = vsel %vm625_vm4, %v1317_v51, %v624_v61  ;;  %1073 = vrcp.f32 %v723_v56  ;;  %vm632_vm10 = vcmp.eq.f32.partialorder %v1357_v47, inf  ;;  %vm634_vm11 = vcmp.eq.f32.partialorder %v1357_v47, 0.0 }
 0x187   : > { %v1387_v11 = vpop.eup %1055  ;;  %v1397_v5 = vsel %vm627_vm5, %v628_v60, %v626_v7  ;;  %v1404_v19 = vmax.f32 %v563_v0, 1e-07  ;;  %v1406_v20 = vmax.f32 %v562_v1, 1e-07  ;;  %v724_v21 = vadd.f32 1.1920929e-07, %v1391_v13  ;;  %v555_v24 = vpop.permute.xlu1 %554 }
 0x188   : > { %v1058_v4 = vpop.eup %1057  ;;  %v635_v51 = vand.u32 2147483648, %v1357_v47  ;;  %vm674_vm12 = vcmp.eq.f32.partialorder %v1359_v48, inf  ;;  %v797_v17 = vadd.f32 %v796_v16, %v1366_v50  ;;  %v725_v25 = vadd.f32 1.1920929e-07, %v1397_v5 }
 0x189   : > { %v1060_v18 = vpop.eup %1059  ;;  %v652_v46 = vmul.f32 %v1058_v4, %v1339_v38  ;;  %vm676_vm13 = vcmp.eq.f32.partialorder %v1359_v48, 0.0  ;;  %1075 = vrsqrt.f32 %v1404_v19  ;;  %v677_v28 = vand.u32 2147483648, %v1359_v48 }
 0x18a   : > { %v1412_v22 = vpop.eup %1061  ;;  %vm667_vm14 = vcmp.eq.f32.partialorder %v1366_v50, inf  ;;  %1077 = vrsqrt.f32 %v1406_v20  ;;  %vm669_vm15 = vcmp.eq.f32.partialorder %v1366_v50, 0.0  ;;  %v798_v34 = vadd.f32 %v797_v17, %v1359_v48 }
 0x18b   : > { %v654_v23 = vsel %vm653_vm6, %v1339_v38, %v652_v46  ;;  %v1064_v29 = vpop.eup %1063  ;;  %1079 = vrcp.f32 %v724_v21  ;;  %v670_v38 = vand.u32 2147483648, %v1366_v50  ;;  %v564_v14 = vadd.f32 %v555_v24, %v1265_v6 }
 0x18c   : > { %v657_v30 = vsel %vm655_vm7, %v656_v8, %v654_v23  ;;  %v1066_v26 = vpop.eup %1065  ;;  %v659_v55 = vmul.f32 %v1064_v29, %v1355_v3  ;;  %1081 = vrcp.f32 %v725_v25  ;;  %vm688_vm0 = vcmp.eq.f32.partialorder %v1404_v19, inf }
 0x18d   : > { %v702_v32 = vsub.f32 %v657_v30, %v1310_v9  ;;  %v711_v33 = vadd.f32 1.1920929e-07, %v657_v30  ;;  %v1068_v35 = vpop.eup %1067  ;;  %v631_v37 = vmul.f32 %v1066_v26, %v1357_v47  ;;  %v691_v45 = vand.u32 2147483648, %v1404_v19 }
 0x18e   : > { %v1070_v39 = vpop.eup %1069  ;;  %v661_v9 = vsel %vm660_vm8, %v1355_v3, %v659_v55  ;;  %v673_v44 = vmul.f32 %v1068_v35, %v1359_v48  ;;  %vm690_vm1 = vcmp.eq.f32.partialorder %v1404_v19, 0.0  ;;  %v799_v53 = vadd.f32 %v798_v34, %v1406_v20 }
 0x18f   : > { %v732_v12 = vmul.f32 %v1054_v62, %v711_v33  ;;  %v1072_v36 = vpop.eup %1071  ;;  %v664_v40 = vsel %vm662_vm9, %v663_v15, %v661_v9  ;;  %v633_v42 = vsel %vm632_vm10, %v1357_v47, %v631_v37  ;;  %v775_v49 = vmul.f32 %v702_v32, %v702_v32 }
 0x190   : > { %v1074_v57 = vpop.eup %1073  ;;  %v703_v6 = vsub.f32 %v664_v40, %v1324_v27  ;;  %v712_v2 = vadd.f32 1.1920929e-07, %v664_v40  ;;  %v1448_v3 = vsel %vm634_vm11, %v635_v51, %v633_v42  ;;  %v675_v43 = vsel %vm674_vm12, %v1359_v48, %v673_v44 }
 0x191   : > { %1083 = vlog2.f32 %v732_v12  ;;  %v666_v52 = vmul.f32 %v1072_v36, %v1366_v50  ;;  %v678_v27 = vsel %vm676_vm13, %v677_v28, %v675_v43  ;;  %vm681_vm2 = vcmp.eq.f32.partialorder %v1406_v20, inf }
 0x192   : > { %v734_v54 = vmul.f32 %v1060_v18, %v712_v2  ;;  %v776_v56 = vmul.f32 %v703_v6, %v703_v6  ;;  %v726_v47 = vadd.f32 1.1920929e-07, %v1448_v3  ;;  %v714_v59 = vadd.f32 1.1920929e-07, %v678_v27 }
 0x193   : > { %v668_v60 = vsel %vm667_vm14, %v1366_v50, %v666_v52  ;;  %v1467_v61 = vmax.f32 %v564_v14, 1e-07  ;;  %v1076_v62 = vpop.eup %1075  ;;  %vm683_vm3 = vcmp.eq.f32.partialorder %v1406_v20, 0.0  ;;  %v684_v63 = vand.u32 2147483648, %v1406_v20 }
 0x194   : > { %1085 = vlog2.f32 %v734_v54  ;;  %v671_v48 = vsel %vm669_vm15, %v670_v38, %v668_v60  ;;  %v1078_v0 = vpop.eup %1077  ;;  %v783_v1 = vadd.f32 %v1350_v41, %v775_v49  ;;  %v738_v7 = vmul.f32 %v1074_v57, %v714_v59 }
 0x195   : > { %v704_v8 = vsub.f32 %v671_v48, %v1334_v31  ;;  %v800_v10 = vadd.f32 %v799_v53, %v1404_v19  ;;  %v713_v4 = vadd.f32 1.1920929e-07, %v671_v48  ;;  %v687_v15 = vmul.f32 %v1076_v62, %v1404_v19  ;;  %v1080_v50 = vpop.eup %1079 }
 0x196   : > { %v680_v16 = vmul.f32 %v1078_v0, %v1406_v20  ;;  %1087 = vrsqrt.f32 %v1467_v61  ;;  %v784_v18 = vadd.f32 %v783_v1, %v776_v56  ;;  %v705_v46 = vsub.f32 %v678_v27, %v1353_v58  ;;  %v1082_v41 = vpop.eup %1081 }
 0x197   : > { %1089 = vrcp.f32 %v726_v47  ;;  %v777_v21 = vmul.f32 %v704_v8, %v704_v8  ;;  %v736_v31 = vmul.f32 %v1412_v22, %v713_v4  ;;  %v689_v51 = vsel %vm688_vm0, %v1404_v19, %v687_v15 }
 0x198   : > { %1091 = vlog2.f32 %v738_v7  ;;  %v682_v17 = vsel %vm681_vm2, %v1406_v20, %v680_v16  ;;  %v692_v23 = vsel %vm690_vm1, %v691_v45, %v689_v51  ;;  %v801_v29 = vadd.f32 %v800_v10, %v1467_v61 }
 0x199   : > { %v785_v25 = vadd.f32 %v784_v18, %v777_v21  ;;  %v685_v58 = vsel %vm683_vm3, %v684_v63, %v682_v17  ;;  %v748_v28 = vmul.f32 0.6931472, %v1070_v39  ;;  %1093 = vlog2.f32 %v736_v31 }
 0x19a   : > { %v716_v22 = vadd.f32 1.1920929e-07, %v692_v23  ;;  %v706_v24 = vsub.f32 %v685_v58, %v1391_v13  ;;  %v778_v26 = vmul.f32 %v705_v46, %v705_v46  ;;  %v715_v19 = vadd.f32 1.1920929e-07, %v685_v58  ;;  %922 = vst [vmem:[%s1497_s5 + $0x8] sm:$0xff] %v801_v29 }
 0x19b   : > { %v1084_v30 = vpop.eup %1083  ;;  %v746_v32 = vmul.f32 0.6931472, %v1387_v11  ;;  %v764_v34 = vand.u32 2147483647, %v748_v28  ;;  %v707_v13 = vsub.f32 %v692_v23, %v1397_v5  ;;  %vm695_vm4 = vcmp.eq.f32.partialorder %v1467_v61, inf }
 0x19c   : > { %v750_v20 = vmul.f32 0.6931472, %v1084_v30  ;;  %v742_v33 = vmul.f32 %v1082_v41, %v716_v22  ;;  %v786_v55 = vadd.f32 %v785_v25, %v778_v26  ;;  %v740_v35 = vmul.f32 %v1080_v50, %v715_v19 }
 0x19d   : > { %v779_v37 = vmul.f32 %v706_v24, %v706_v24  ;;  %v763_v9 = vand.u32 2147483647, %v746_v32  ;;  %v698_v45 = vand.u32 2147483648, %v1467_v61  ;;  %v780_v49 = vmul.f32 %v707_v13, %v707_v13 }
 0x19e   : > { %v1086_v38 = vpop.eup %1085  ;;  %1095 = vlog2.f32 %v740_v35  ;;  %v765_v14 = vand.u32 2147483647, %v750_v20  ;;  %vm697_vm5 = vcmp.eq.f32.partialorder %v1467_v61, 0.0 }
 0x19f   : > { %v752_v39 = vmul.f32 0.6931472, %v1086_v38  ;;  %1097 = vlog2.f32 %v742_v33  ;;  %v787_v40 = vadd.f32 %v786_v55, %v779_v37  ;;  %v806_v44 = vadd.f32 %v764_v34, %v763_v9 }
 0x1a0   : > { %v1088_v12 = vpop.eup %1087 }
 0x1a1   : > { %v1090_v36 = vpop.eup %1089  ;;  %v694_v11 = vmul.f32 %v1088_v12, %v1467_v61  ;;  %v766_v57 = vand.u32 2147483647, %v752_v39  ;;  %v807_v2 = vadd.f32 %v806_v44, %v765_v14  ;;  %v788_v53 = vadd.f32 %v787_v40, %v780_v49 }
 0x1a2   : > { %v1092_v42 = vpop.eup %1091 }
 0x1a3   : > { %v696_v6 = vsel %vm695_vm4, %v1467_v61, %v694_v11  ;;  %v1094_v5 = vpop.eup %1093  ;;  %v756_v27 = vmul.f32 0.6931472, %v1092_v42  ;;  %v808_v47 = vadd.f32 %v807_v2, %v766_v57 }
 0x1a4   : > { %v699_v43 = vsel %vm697_vm5, %v698_v45, %v696_v6  ;;  %v754_v52 = vmul.f32 0.6931472, %v1094_v5 }
 0x1a5   : > { %v708_v54 = vsub.f32 %v699_v43, %v1448_v3  ;;  %v717_v56 = vadd.f32 1.1920929e-07, %v699_v43  ;;  %v768_v61 = vand.u32 2147483647, %v756_v27 }
 0x1a6   : > { %v767_v59 = vand.u32 2147483647, %v754_v52 }
 0x1a7   : > { %v744_v60 = vmul.f32 %v1090_v36, %v717_v56  ;;  %v781_v62 = vmul.f32 %v708_v54, %v708_v54 }
 0x1a8   : > { %v1096_v48 = vpop.eup %1095  ;;  %v809_v63 = vadd.f32 %v808_v47, %v767_v59 }
 0x1a9   : > { %1099 = vlog2.f32 %v744_v60  ;;  %v789_v0 = vadd.f32 %v788_v53, %v781_v62  ;;  %v758_v1 = vmul.f32 0.6931472, %v1096_v48  ;;  %v1098_v7 = vpop.eup %1097 }
 0x1aa   : > { %v810_v8 = vadd.f32 %v809_v63, %v768_v61  ;;  %v760_v4 = vmul.f32 0.6931472, %v1098_v7 }
 0x1ab   : > { %v769_v10 = vand.u32 2147483647, %v758_v1  ;;  %791 = vst [vmem:[%s1497_s5] sm:$0xff] %v789_v0 }
 0x1ac   : > { %v770_v15 = vand.u32 2147483647, %v760_v4 }
 0x1ad   : > { %v811_v3 = vadd.f32 %v810_v8, %v769_v10 }
 0x1af   : > { %v812_v50 = vadd.f32 %v811_v3, %v770_v15 }
 0x1b3   : > { %v1100_v16 = vpop.eup %1099 }
 0x1b4   : > { %v762_v18 = vmul.f32 0.6931472, %v1100_v16 }
 0x1b6   : > { %v771_v46 = vand.u32 2147483647, %v762_v18 }
 0x1b8   : > { %v813_v21 = vadd.f32 %v812_v50, %v771_v46 }
 0x1ba   : > { %924 = vst [vmem:[%s1497_s5 + $0x10] sm:$0xff] %v813_v21 }
 0x1bb PF: > { %s13_s14 = sadd.s32 1, %s1123_s14   ;;  %s1523_s12 = smov %s1119_s13 }
 0x1bc   : > { %p10_p6 = scmp.ge.s32.totalorder %s13_s14, 4   ;;  %s1524_s13 = smov %s1526_s15 }
 0x1be   :  { %12 = sbr.rel (!%p10_p6) target bundleno = 2 (0x2), region = 71 }

// kernel: mrstft_loss.4
= control target key start
LH: loop header
LB: loop body
LE: loop exit
PB: predicated region body
PF: predicated region fallthrough
CT: control target
= control target key end

     0   :  { %s796_s12 = smov 0   ;;  %s798_s13 = smov 0   ;;  %s900_s0 = inlined_call_operand.vmem [shape: bf16[48,128], index: 0, kind: input, shape index: {}]   ;;  %s901_s1 = inlined_call_operand.vmem [shape: bf16[48,128], index: 1, kind: input, shape index: {}]   ;;  %s902_s2 = inlined_call_operand.vmem [shape: bf16[128,256], index: 2, kind: input, shape index: {}]   ;;  %s903_s3 = inlined_call_operand.vmem [shape: f32[2,3,8,128], index: 3, kind: output, shape index: {}]  }
   0x1   :  { %s800_s14 = smov 0  }
   0x2 LB: > { %s25_s15 = sadd.s32 1, %s769_s13  ;;  %p642_p0 = scmp.ge.s32.totalorder %s773_s14, 1  ;;  %s773_s14 = sphi %s800_s14, %s13_s14   ;;  %s769_s13 = sphi %s798_s13, %s905_s13   ;;  %s765_s12 = sphi %s796_s12, %s904_s12  }
   0x3   : > { %p27_p1 = scmp.ge.s32.totalorder %s25_s15, 2  ;;  %p169_p2 = scmp.lt.s32.totalorder %s773_s14, 3 }
   0x5   : > { %s907_s15 = smov (%p27_p1, %s25_s15), 0  ;;  %p170_p3 = pnand %p642_p0, %p169_p2 }
   0x6   : > { %v699_v0 = vld [vmem:[%s902_s2 + $0x4] ss:$8 sps:$4 sm:$0xff] (!%p170_p3)   ;;  %s201_s18 = smul.u32 (!%p170_p3), 3, %s765_s12  ;;  %v701_v1 = vld [vmem:[%s902_s2] ss:$8 sps:$4 sm:$0xff] (!%p170_p3)   ;;  %v775_v2 = vmov (!%p170_p3), 0  }
   0x7   : > { %173 = sbr.rel (%p170_p3) target bundleno = 315 (0x13b), region = 32  ;;  %370 = vmatprep.mubr.bf16.mxu0 (!%p170_p3), %v775_v2  ;;  %446 = vmatprep.mubr.bf16.mxu1 (!%p170_p3), %v775_v2  ;;  %v702_v3 = vld [vmem:[%s902_s2 + $0x14] ss:$8 sps:$4 sm:$0xff] (!%p170_p3)   ;;  %v704_v4 = vld [vmem:[%s902_s2 + $0x10] ss:$8 sps:$4 sm:$0xff] (!%p170_p3)   ;;  %p216_p5 = scmp.lt.s32.totalorder (!%p170_p3), %s765_s12, 1 }
   0x8   : > { %338 = vmatprep.subr.bf16.mxu0 (!%p170_p3), %v699_v0  ;;  %414 = vmatprep.subr.bf16.mxu1 (!%p170_p3), %v699_v0  ;;  %p202_p4 = scmp.lt.s32.totalorder (!%p170_p3), %s201_s18, 5  ;;  %v705_v5 = vld [vmem:[%s902_s2 + $0x24] ss:$8 sps:$4 sm:$0xff] (!%p170_p3)   ;;  %v707_v6 = vld [vmem:[%s902_s2 + $0x20] ss:$8 sps:$4 sm:$0xff] (!%p170_p3)  }
   0x9   : > { %339 = vmatpush1.bf16.msra.mxu0 (!%p170_p3), %v701_v1  ;;  %415 = vmatpush1.bf16.msra.mxu1 (!%p170_p3), %v701_v1  ;;  %v708_v7 = vld [vmem:[%s902_s2 + $0x34] ss:$8 sps:$4 sm:$0xff] (!%p170_p3)   ;;  %v710_v8 = vld [vmem:[%s902_s2 + $0x30] ss:$8 sps:$4 sm:$0xff] (!%p170_p3)   ;;  %v711_v9 = vld [vmem:[%s902_s2 + $0x44] ss:$8 sps:$4 sm:$0xff] (!%p170_p3)  }
   0xa   : > { %340 = vmatprep.subr.bf16.mxu0 (!%p170_p3), %v702_v3  ;;  %416 = vmatprep.subr.bf16.mxu1 (!%p170_p3), %v702_v3  ;;  %v713_v10 = vld [vmem:[%s902_s2 + $0x40] ss:$8 sps:$4 sm:$0xff] (!%p170_p3)   ;;  %v714_v11 = vld [vmem:[%s902_s2 + $0x54] ss:$8 sps:$4 sm:$0xff] (!%p170_p3)   ;;  %v716_v12 = vld [vmem:[%s902_s2 + $0x50] ss:$8 sps:$4 sm:$0xff] (!%p170_p3)  }
   0xb   : > { %v717_v13 = vld [vmem:[%s902_s2 + $0x64] ss:$8 sps:$4 sm:$0xff] (!%p170_p3)   ;;  %v719_v14 = vld [vmem:[%s902_s2 + $0x60] ss:$8 sps:$4 sm:$0xff] (!%p170_p3)   ;;  %v720_v15 = vld [vmem:[%s902_s2 + $0x74] ss:$8 sps:$4 sm:$0xff] (!%p170_p3)  }
   0xc   : > { %v722_v16 = vld [vmem:[%s902_s2 + $0x70] ss:$8 sps:$4 sm:$0xff] (!%p170_p3)  }
   0xd   : > { %341 = vmatpush1.bf16.msra.mxu0 (!%p170_p3), %v704_v4  ;;  %417 = vmatpush1.bf16.msra.mxu1 (!%p170_p3), %v704_v4 }
   0xe   : > { %s909_s18 = smov (!%p202_p4, %s201_s18), 5  ;;  %342 = vmatprep.subr.bf16.mxu0 %v705_v5  ;;  %418 = vmatprep.subr.bf16.mxu1 %v705_v5  ;;  %s911_s12 = smov (!%p216_p5, %s765_s12), 1 }
   0xf   : > { %s643_s27 = sshll.u32 %s909_s18, 2  ;;  %s672_s6 = smul.u32 24, %s911_s12 }
  0x10   : > { %s841_s7 = scalar_lea.vmem %s900_s0, %s643_s27  ;;  %s846_s10 = scalar_lea.vmem %s901_s1, %s643_s27 }
  0x11   : > { %343 = vmatpush1.bf16.msra.mxu0 %v707_v6  ;;  %419 = vmatpush1.bf16.msra.mxu1 %v707_v6  ;;  %v723_v17 = vld [vmem:[%s841_s7] sm:$0xff]   ;;  %v725_v19 = vld [vmem:[%s841_s7 + $0x8] ss:$0 sps:$4 sm:$0xff]   ;;  %s886_s9 = scalar_lea.vmem %s903_s3, %s672_s6 }
  0x12   : > { %344 = vmatprep.subr.bf16.mxu0 %v708_v7  ;;  %420 = vmatprep.subr.bf16.mxu1 %v708_v7  ;;  %v724_v18 = vld [vmem:[%s846_s10] sm:$0xff]   ;;  %v726_v20 = vld [vmem:[%s846_s10 + $0x8] ss:$0 sps:$4 sm:$0xff]  }
  0x15   : > { %345 = vmatpush1.bf16.msra.mxu0 %v710_v8  ;;  %421 = vmatpush1.bf16.msra.mxu1 %v710_v8 }
  0x16   : > { %346 = vmatprep.subr.bf16.mxu0 %v711_v9  ;;  %422 = vmatprep.subr.bf16.mxu1 %v711_v9 }
  0x19   : > { %347 = vmatpush1.bf16.msra.mxu0 %v713_v10  ;;  %423 = vmatpush1.bf16.msra.mxu1 %v713_v10 }
  0x1a   : > { %348 = vmatprep.subr.bf16.mxu0 %v714_v11  ;;  %424 = vmatprep.subr.bf16.mxu1 %v714_v11 }
  0x1d   : > { %349 = vmatpush1.bf16.msra.mxu0 %v716_v12  ;;  %425 = vmatpush1.bf16.msra.mxu1 %v716_v12 }
  0x1e   : > { %350 = vmatprep.subr.bf16.mxu0 %v717_v13  ;;  %426 = vmatprep.subr.bf16.mxu1 %v717_v13 }
  0x21   : > { %351 = vmatpush1.bf16.msra.mxu0 %v719_v14  ;;  %427 = vmatpush1.bf16.msra.mxu1 %v719_v14 }
  0x22   : > { %352 = vmatprep.subr.bf16.mxu0 %v720_v15  ;;  %428 = vmatprep.subr.bf16.mxu1 %v720_v15 }
  0x25   : > { %353 = vmatpush1.bf16.msra.mxu0 %v722_v16  ;;  %429 = vmatpush1.bf16.msra.mxu1 %v722_v16 }
  0x28   : > { %371 = vmatmul.mubr.bf16.vlgmr.msra.gmra.mrb[0].mxu0 %v723_v17  ;;  %447 = vmatmul.mubr.bf16.vlgmr.msra.gmra.mrb[0].mxu1 %v724_v18 }
  0x29   : > { %380 = vmatprep.mubr.bf16.mxu0 %v775_v2  ;;  %456 = vmatprep.mubr.bf16.mxu1 %v775_v2 }
  0x30   : > { %381 = vmatmul.mubr.bf16.gmra.mrb[4].mxu0 %v725_v19  ;;  %457 = vmatmul.mubr.bf16.gmra.mrb[4].mxu1 %v726_v20 }
  0xfb   : > { %v372_v21 = vpop.f32.mrb[0].mxu0  ;;  %v448_v22 = vpop.f32.mrb[0].mxu1 }
  0xfc   : > { %v389_v23 = vmul.f32 %v372_v21, %v372_v21  ;;  %v465_v24 = vmul.f32 %v448_v22, %v448_v22  ;;  %v374_v25 = vpop.f32.mrb[1].mxu0  ;;  %v450_v26 = vpop.f32.mrb[1].mxu1 }
  0xfd   : > { %v392_v27 = vmul.f32 %v374_v25, %v374_v25  ;;  %v468_v28 = vmul.f32 %v450_v26, %v450_v26  ;;  %v376_v29 = vpop.f32.mrb[2].mxu0  ;;  %v452_v30 = vpop.f32.mrb[2].mxu1 }
  0xfe   : > { %v390_v31 = vmul.f32 %v376_v29, %v376_v29  ;;  %v466_v32 = vmul.f32 %v452_v30, %v452_v30  ;;  %v378_v33 = vpop.f32.mrb[3].mxu0  ;;  %v454_v34 = vpop.f32.mrb[3].mxu1 }
  0xff   : > { %v395_v35 = vadd.f32 %v392_v27, %v389_v23  ;;  %v471_v36 = vadd.f32 %v468_v28, %v465_v24  ;;  %v393_v37 = vmul.f32 %v378_v33, %v378_v33  ;;  %v469_v38 = vmul.f32 %v454_v34, %v454_v34 }
 0x101   : > { %v398_v39 = vmax.f32 %v395_v35, 1e-07  ;;  %v474_v40 = vmax.f32 %v471_v36, 1e-07  ;;  %v396_v41 = vadd.f32 %v393_v37, %v390_v31  ;;  %v472_v42 = vadd.f32 %v469_v38, %v466_v32 }
 0x103   : > { %727 = vrsqrt.f32 %v398_v39  ;;  %v382_v43 = vpop.f32.mrb[4].mxu0  ;;  %v458_v44 = vpop.f32.mrb[4].mxu1  ;;  %v399_v47 = vmax.f32 %v396_v41, 1e-07  ;;  %v475_v48 = vmax.f32 %v472_v42, 1e-07 }
 0x104   : > { %729 = vrsqrt.f32 %v474_v40  ;;  %v384_v45 = vpop.f32.mrb[5].mxu0  ;;  %v460_v46 = vpop.f32.mrb[5].mxu1  ;;  %v391_v49 = vmul.f32 %v382_v43, %v382_v43  ;;  %v467_v50 = vmul.f32 %v458_v44, %v458_v44  ;;  %vm479_vm0 = vcmp.eq.f32.partialorder %v398_v39, inf }
 0x105   : > { %v386_v51 = vpop.f32.mrb[6].mxu0  ;;  %v462_v52 = vpop.f32.mrb[6].mxu1  ;;  %v394_v53 = vmul.f32 %v384_v45, %v384_v45  ;;  %v470_v54 = vmul.f32 %v460_v46, %v460_v46  ;;  %731 = vrsqrt.f32 %v399_v47  ;;  %v553_v57 = vadd.f32 %v475_v48, %v474_v40 }
 0x106   : > { %v387_v55 = vpop.f32.mrb[7].mxu0  ;;  %v463_v56 = vpop.f32.mrb[7].mxu1  ;;  %733 = vrsqrt.f32 %v475_v48  ;;  %v482_v1 = vand.u32 2147483648, %v398_v39  ;;  %vm481_vm1 = vcmp.eq.f32.partialorder %v398_v39, 0.0  ;;  %vm500_vm2 = vcmp.eq.f32.partialorder %v474_v40, inf }
 0x107   : > { %v397_v58 = vadd.f32 %v394_v53, %v391_v49  ;;  %v473_v59 = vadd.f32 %v470_v54, %v467_v50  ;;  %v503_v5 = vand.u32 2147483648, %v474_v40  ;;  %vm502_vm3 = vcmp.eq.f32.partialorder %v474_v40, 0.0 }
 0x108   : > { %vm486_vm4 = vcmp.eq.f32.partialorder %v399_v47, inf  ;;  %vm488_vm5 = vcmp.eq.f32.partialorder %v399_v47, 0.0  ;;  %v489_v14 = vand.u32 2147483648, %v399_v47  ;;  %vm507_vm6 = vcmp.eq.f32.partialorder %v475_v48, inf }
 0x109   : > { %v400_v60 = vmax.f32 %v397_v58, 1e-07  ;;  %v476_v61 = vmax.f32 %v473_v59, 1e-07  ;;  %v510_v17 = vand.u32 2147483648, %v475_v48  ;;  %vm509_vm7 = vcmp.eq.f32.partialorder %v475_v48, 0.0 }
 0x10b   : > { %735 = vrsqrt.f32 %v400_v60  ;;  %v554_v3 = vadd.f32 %v553_v57, %v476_v61  ;;  %vm493_vm8 = vcmp.eq.f32.partialorder %v400_v60, inf  ;;  %v496_v28 = vand.u32 2147483648, %v400_v60 }
 0x10c   : > { %737 = vrsqrt.f32 %v476_v61  ;;  %vm495_vm9 = vcmp.eq.f32.partialorder %v400_v60, 0.0  ;;  %vm514_vm10 = vcmp.eq.f32.partialorder %v476_v61, inf  ;;  %v517_v31 = vand.u32 2147483648, %v476_v61 }
 0x10d   : > { %v728_v62 = vpop.eup %727  ;;  %667 = vst [vmem:[%s886_s9 + $0x8] sm:$0xff] %v554_v3  ;;  %vm516_vm11 = vcmp.eq.f32.partialorder %v476_v61, 0.0 }
 0x10e   : > { %v730_v63 = vpop.eup %729  ;;  %v478_v0 = vmul.f32 %v728_v62, %v398_v39 }
 0x10f   : > { %v499_v2 = vmul.f32 %v730_v63, %v474_v40  ;;  %v732_v6 = vpop.eup %731 }
 0x110   : > { %v480_v4 = vsel %vm479_vm0, %v398_v39, %v478_v0  ;;  %v734_v9 = vpop.eup %733  ;;  %v485_v12 = vmul.f32 %v732_v6, %v399_v47 }
 0x111   : > { %v483_v7 = vsel %vm481_vm1, %v482_v1, %v480_v4  ;;  %v501_v8 = vsel %vm500_vm2, %v474_v40, %v499_v2  ;;  %v506_v15 = vmul.f32 %v734_v9, %v475_v48 }
 0x112   : > { %v525_v10 = vadd.f32 1.1920929e-07, %v483_v7  ;;  %v504_v11 = vsel %vm502_vm3, %v503_v5, %v501_v8  ;;  %v487_v16 = vsel %vm486_vm4, %v399_v47, %v485_v12 }
 0x113   : > { %v519_v13 = vsub.f32 %v504_v11, %v483_v7  ;;  %v490_v18 = vsel %vm488_vm5, %v489_v14, %v487_v16  ;;  %v508_v19 = vsel %vm507_vm6, %v475_v48, %v506_v15  ;;  %v522_v37 = vadd.f32 1.1920929e-07, %v504_v11 }
 0x114   : > { %739 = vrcp.f32 %v525_v10  ;;  %v526_v20 = vadd.f32 1.1920929e-07, %v490_v18  ;;  %v511_v21 = vsel %vm509_vm7, %v510_v17, %v508_v19 }
 0x115   : > { %v736_v22 = vpop.eup %735  ;;  %v520_v23 = vsub.f32 %v511_v21, %v490_v18  ;;  %v544_v26 = vmul.f32 %v519_v13, %v519_v13  ;;  %v523_v42 = vadd.f32 1.1920929e-07, %v511_v21 }
 0x116   : > { %v738_v24 = vpop.eup %737  ;;  %741 = vrcp.f32 %v526_v20  ;;  %v492_v25 = vmul.f32 %v736_v22, %v400_v60 }
 0x117   : > { %v545_v27 = vmul.f32 %v520_v23, %v520_v23  ;;  %v513_v29 = vmul.f32 %v738_v24, %v476_v61 }
 0x118   : > { %v494_v30 = vsel %vm493_vm8, %v400_v60, %v492_v25 }
 0x119   : > { %v547_v32 = vadd.f32 %v545_v27, %v544_v26  ;;  %v497_v33 = vsel %vm495_vm9, %v496_v28, %v494_v30  ;;  %v515_v34 = vsel %vm514_vm10, %v476_v61, %v513_v29 }
 0x11a   : > { %v527_v35 = vadd.f32 1.1920929e-07, %v497_v33  ;;  %v518_v36 = vsel %vm516_vm11, %v517_v31, %v515_v34 }
 0x11b   : > { %v521_v38 = vsub.f32 %v518_v36, %v497_v33  ;;  %v524_v46 = vadd.f32 1.1920929e-07, %v518_v36 }
 0x11c   : > { %743 = vrcp.f32 %v527_v35 }
 0x11d   : > { %v546_v41 = vmul.f32 %v521_v38, %v521_v38 }
 0x11e   : > { %v740_v39 = vpop.eup %739 }
 0x11f   : > { %v529_v40 = vmul.f32 %v740_v39, %v522_v37  ;;  %v548_v43 = vadd.f32 %v547_v32, %v546_v41 }
 0x120   : > { %v742_v44 = vpop.eup %741 }
 0x121   : > { %745 = vlog2.f32 %v529_v40  ;;  %v531_v45 = vmul.f32 %v742_v44, %v523_v42  ;;  %550 = vst [vmem:[%s886_s9] sm:$0xff] %v548_v43 }
 0x123   : > { %747 = vlog2.f32 %v531_v45 }
 0x126   : > { %v744_v47 = vpop.eup %743 }
 0x127   : > { %v533_v48 = vmul.f32 %v744_v47, %v524_v46 }
 0x129   : > { %749 = vlog2.f32 %v533_v48 }
 0x12b   : > { %v746_v49 = vpop.eup %745 }
 0x12c   : > { %v535_v50 = vmul.f32 0.6931472, %v746_v49 }
 0x12d   : > { %v748_v51 = vpop.eup %747 }
 0x12e   : > { %v537_v52 = vmul.f32 0.6931472, %v748_v51  ;;  %v540_v53 = vand.u32 2147483647, %v535_v50 }
 0x130   : > { %v541_v54 = vand.u32 2147483647, %v537_v52 }
 0x132   : > { %v559_v55 = vadd.f32 %v541_v54, %v540_v53 }
 0x133   : > { %v750_v56 = vpop.eup %749 }
 0x134   : > { %v539_v57 = vmul.f32 0.6931472, %v750_v56 }
 0x136   : > { %v542_v58 = vand.u32 2147483647, %v539_v57 }
 0x138   : > { %v560_v59 = vadd.f32 %v559_v55, %v542_v58 }
 0x13a   : > { %669 = vst [vmem:[%s886_s9 + $0x10] sm:$0xff] %v560_v59 }
 0x13b PF: > { %s13_s14 = sadd.s32 1, %s773_s14   ;;  %s904_s12 = smov %s769_s13 }
 0x13c   : > { %p10_p6 = scmp.ge.s32.totalorder %s13_s14, 4   ;;  %s905_s13 = smov %s907_s15 }
 0x13e   :  { %12 = sbr.rel (!%p10_p6) target bundleno = 2 (0x2), region = 71 }

</bundles_post_ra>
